<compile_context>
chip_gen: v5e
topology: v5e:2x2
jax: 0.10.0
libtpu: 0.0.40
codegen_flags: <defaults>
</compile_context>

<pallas_src>
import numpy as np
import jax
import jax.numpy as jnp
from jax import lax
from jax.experimental import pallas as pl
from jax.experimental.pallas import tpu as pltpu

EPS = 1e-5   # InstanceNorm2d default eps
SCALE = 16   # F.interpolate(scale_factor=16)


def _bilinear_matrix(in_size: int, scale: int) -> np.ndarray:
    """Interpolation matrix A (out, in) such that out = A @ in reproduces
    PyTorch F.interpolate(mode='bilinear', align_corners=False)."""
    out_size = in_size * scale
    src = (np.arange(out_size, dtype=np.float64) + 0.5) / scale - 0.5
    src = np.maximum(src, 0.0)  # PyTorch clamps negative source coords to 0
    i0 = np.minimum(np.floor(src).astype(np.int64), in_size - 1)
    i1 = np.minimum(i0 + 1, in_size - 1)
    frac = src - i0
    A = np.zeros((out_size, in_size), dtype=np.float64)
    A[np.arange(out_size), i0] += 1.0 - frac
    A[np.arange(out_size), i1] += frac
    return A.astype(np.float32)


def _make_kernel(hw: int):
    """Build the kernel closure; hw = H*W (spatial size for InstanceNorm)."""
    inv_hw = 1.0 / float(hw)

    def kernel(x_ref, p_ref, awt_ref, b_ref, bias_ref, o_ref):
        # x_ref   : (C_in*H, W)        f32   one batch element, row index = (c, h)
        # p_ref   : (C_in*H, C_in*H)   f32   block-diag "sum over h, broadcast" matrix
        # awt_ref : (W, W_out)         bf16  width-interp matrix (pre-transposed)
        # b_ref   : (TILE_R, C_in*H)   bf16  fused conv x height-interp rows, this tile
        # bias_ref: (TILE_R, 1)        f32   conv bias repeated per output row
        # o_ref   : (TILE_R, W_out)          rows = (c_out, p) flattened; lane-dense
        x = x_ref[...]  # f32

        # ---- InstanceNorm2d (affine=False) stats, no reshapes/transposes ----
        s = jnp.sum(x, axis=-1, keepdims=True)        # (CH, 1) per-row sums
        s2 = jnp.sum(x * x, axis=-1, keepdims=True)   # (CH, 1) per-row sq-sums
        csum = jnp.dot(p_ref[...], s, preferred_element_type=jnp.float32)
        csum2 = jnp.dot(p_ref[...], s2, preferred_element_type=jnp.float32)
        mean = csum * inv_hw                          # per-channel mean, per-row bcast
        var = csum2 * inv_hw - mean * mean            # biased variance (PyTorch)
        r = lax.rsqrt(jnp.maximum(var, 0.0) + EPS)    # rsqrt -> EUP slot (cheap)
        xn = ((x - mean) * r).astype(jnp.bfloat16)    # (CH, W)

        # ---- width interpolation (lane stays dense) ----
        z = jnp.dot(xn, awt_ref[...], preferred_element_type=jnp.float32)  # (CH, W_out)

        # ---- fused 1x1 conv + height interpolation + bias ----
        out = jnp.dot(b_ref[...], z.astype(jnp.bfloat16),
                      preferred_element_type=jnp.float32) + bias_ref[...]
        o_ref[...] = out.astype(o_ref.dtype)

    return kernel


def _pick_row_tile(num_rows: int, w_out: int,
                   max_rows: int = 512, max_bytes: int = 4 << 20) -> int:
    """Largest multiple-of-8 divisor of num_rows with <=max_rows rows and
    <=max_bytes f32 output block (bounded VMEM, >=2 tiles to feed both TCs)."""
    if num_rows <= 8 or num_rows % 8 != 0:
        return num_rows
    best = 8
    t = 8
    while t <= num_rows:
        if num_rows % t == 0 and t <= max_rows and t * w_out * 4 <= max_bytes:
            best = t
        t += 8
    return best


def segmenter_forward(x, weight, bias, scale=SCALE, out_dtype=jnp.float32):
    """x: (N, C_in, H, W); weight: (C_out, C_in, 1, 1); bias: (C_out,)"""
    N, C_in, H, W = x.shape
    C_out = weight.shape[0]
    H_out, W_out = H * scale, W * scale
    CH = C_in * H
    R = C_out * H_out

    # Precomputed constants (wrapper side; all tiny vs the output).
    ah = jnp.asarray(_bilinear_matrix(H, scale))                           # (H_out, H)
    aw_t = jnp.asarray(_bilinear_matrix(W, scale).T).astype(jnp.bfloat16)  # (W, W_out)
    w2d = weight.reshape(C_out, C_in).astype(jnp.float32)
    # Fold the 1x1 conv into the height-interp matrix (raises matmul K to C_in*H).
    b_mat = jnp.einsum("oc,ph->opch", w2d, ah).reshape(R, CH).astype(jnp.bfloat16)
    bias_rep = jnp.repeat(bias.astype(jnp.float32), H_out).reshape(R, 1)
    # Block-diagonal matrix: sums the H rows of each channel and broadcasts back.
    p_mat = jnp.asarray(np.kron(np.eye(C_in, dtype=np.float32),
                                np.ones((H, H), dtype=np.float32)))        # (CH, CH)

    # Free reshape of contiguous HBM array: rows become (c, h), lanes = W.
    x2 = x.reshape(N, CH, W).astype(jnp.float32)

    tile_r = _pick_row_tile(R, W_out)
    n_r = R // tile_r
    steps = N * n_r

    # Advisory cost estimate for XLA's scheduler around the custom call.
    flops = steps * (2 * CH * W * W_out + 2 * tile_r * CH * W_out + 4 * CH * CH)
    bytes_accessed = (N * CH * W * 4 + CH * CH * 4 + W * W_out * 2
                      + N * R * CH * 2 + R * 4 + N * R * W_out * 4)
    cost = pl.CostEstimate(flops=int(flops),
                           transcendentals=int(steps * CH),
                           bytes_accessed=int(bytes_accessed))

    out_flat = pl.pallas_call(
        _make_kernel(H * W),
        out_shape=jax.ShapeDtypeStruct((N, R, W_out), out_dtype),
        grid_spec=pltpu.PrefetchScalarGridSpec(
            num_scalar_prefetch=0,
            grid=(N, n_r),
            in_specs=[
                pl.BlockSpec((None, CH, W), lambda n, r: (n, 0, 0)),   # x
                pl.BlockSpec((CH, CH), lambda n, r: (0, 0)),           # P
                pl.BlockSpec((W, W_out), lambda n, r: (0, 0)),         # AwT
                pl.BlockSpec((tile_r, CH), lambda n, r: (r, 0)),       # fused B rows
                pl.BlockSpec((tile_r, 1), lambda n, r: (r, 0)),        # bias rows
            ],
            out_specs=pl.BlockSpec((None, tile_r, W_out), lambda n, r: (n, r, 0)),
        ),
        compiler_params=pltpu.CompilerParams(
            dimension_semantics=("parallel", "parallel")),
        cost_estimate=cost,
    )(x2, p_mat, aw_t, b_mat, bias_rep)

    return out_flat.reshape(N, C_out, H_out, W_out)


def _reference(x, weight, bias, scale=SCALE):
    """Plain-JAX f32 reference replicating the PyTorch forward."""
    N, C_in, H, W = x.shape
    C_out = weight.shape[0]
    mean = jnp.mean(x, axis=(2, 3), keepdims=True)
    var = jnp.var(x, axis=(2, 3), keepdims=True)
    xn = (x - mean) / jnp.sqrt(var + EPS)
    y = jnp.einsum("oc,nchw->nohw", weight.reshape(C_out, C_in), xn)
    y = y + bias.reshape(1, C_out, 1, 1)
    ah = jnp.asarray(_bilinear_matrix(H, scale))
    aw = jnp.asarray(_bilinear_matrix(W, scale))
    return jnp.einsum("ph,nchw,qw->ncpq", ah, y, aw)


if __name__ == "__main__":
    # Small shapes consistent with the module: input_dim=4, output_dim=4, H=W=16
    N, C_IN, C_OUT, H, W = 2, 4, 4, 16, 16

    key = jax.random.PRNGKey(0)
    kx, kw, kb = jax.random.split(key, 3)
    x = jax.random.normal(kx, (N, C_IN, H, W), dtype=jnp.float32)

    # Deterministic Conv2d-style init (uniform +-1/sqrt(fan_in)), fan_in = C_IN*1*1
    bound = 1.0 / np.sqrt(C_IN)
    weight = jax.random.uniform(kw, (C_OUT, C_IN, 1, 1), jnp.float32, -bound, bound)
    bias = jax.random.uniform(kb, (C_OUT,), jnp.float32, -bound, bound)

    out = jax.block_until_ready(segmenter_forward(x, weight, bias))
    assert out.shape == (N, C_OUT, H * SCALE, W * SCALE), out.shape

    ref = jax.block_until_ready(_reference(x, weight, bias))
    # bf16 MXU operands (f32 accumulation) -> relaxed tolerance vs f32 reference.
    np.testing.assert_allclose(np.asarray(out), np.asarray(ref), rtol=3e-2, atol=3e-2)

    print("KERNEL_OK")
</pallas_src>

<mosaic_0001>
module attributes {stable_mosaic.version = 11 : i64} {
  func.func @kernel(%arg0: i32, %arg1: i32, %arg2: memref<1x64x16xf32, #tpu.memory_space<vmem>>, %arg3: memref<64x64xf32, #tpu.memory_space<vmem>>, %arg4: memref<16x256xbf16, #tpu.memory_space<vmem>>, %arg5: memref<512x64xbf16, #tpu.memory_space<vmem>>, %arg6: memref<512x1xf32, #tpu.memory_space<vmem>>, %arg7: memref<1x512x256xf32, #tpu.memory_space<vmem>>) attributes {dimension_semantics = [#tpu.dimension_semantics<parallel>, #tpu.dimension_semantics<parallel>], iteration_bounds = array<i64: 2, 2>, scalar_prefetch = 0 : i64, scratch_operands = 0 : i64, tpu.core_type = #tpu.core_type<tc>, window_params = [{transform_indices = @transform_0, window_bounds = array<i64: 1, 64, 16>}, {pipeline_mode = #tpu.pipeline_mode<synchronous>, transform_indices = @transform_1, window_bounds = array<i64: 64, 64>}, {pipeline_mode = #tpu.pipeline_mode<synchronous>, transform_indices = @transform_2, window_bounds = array<i64: 16, 256>}, {transform_indices = @transform_3, window_bounds = array<i64: 512, 64>}, {transform_indices = @transform_4, window_bounds = array<i64: 512, 1>}, {transform_indices = @transform_5, window_bounds = array<i64: 1, 512, 256>}]} {
    %c0 = arith.constant 0 : index
    %c0_0 = arith.constant 0 : index
    %c0_1 = arith.constant 0 : index
    %0 = vector.load %arg2[%c0, %c0_0, %c0_1] : memref<1x64x16xf32, #tpu.memory_space<vmem>>, vector<1x64x16xf32>
    %1 = vector.shape_cast %0 : vector<1x64x16xf32> to vector<64x16xf32>
    %cst = arith.constant dense<0.000000e+00> : vector<64xf32>
    %2 = vector.multi_reduction <add>, %1, %cst [1] : vector<64x16xf32> to vector<64xf32>
    %3 = vector.shape_cast %2 : vector<64xf32> to vector<64x1xf32>
    %4 = arith.mulf %1, %1 : vector<64x16xf32>
    %cst_2 = arith.constant dense<0.000000e+00> : vector<64xf32>
    %5 = vector.multi_reduction <add>, %4, %cst_2 [1] : vector<64x16xf32> to vector<64xf32>
    %6 = vector.shape_cast %5 : vector<64xf32> to vector<64x1xf32>
    %c0_3 = arith.constant 0 : index
    %c0_4 = arith.constant 0 : index
    %7 = vector.load %arg3[%c0_3, %c0_4] : memref<64x64xf32, #tpu.memory_space<vmem>>, vector<64x64xf32>
    %cst_5 = arith.constant dense<0.000000e+00> : vector<64x1xf32>
    %8 = tpu.matmul %7, %3, %cst_5 {dimension_numbers = #tpu.dot_dimension_numbers<[1], [0], [0], [1], [0, 0, 1, 1], [], []>} : vector<64x64xf32>, vector<64x1xf32>, vector<64x1xf32> -> vector<64x1xf32>
    %c0_6 = arith.constant 0 : index
    %c0_7 = arith.constant 0 : index
    %9 = vector.load %arg3[%c0_6, %c0_7] : memref<64x64xf32, #tpu.memory_space<vmem>>, vector<64x64xf32>
    %cst_8 = arith.constant dense<0.000000e+00> : vector<64x1xf32>
    %10 = tpu.matmul %9, %6, %cst_8 {dimension_numbers = #tpu.dot_dimension_numbers<[1], [0], [0], [1], [0, 0, 1, 1], [], []>} : vector<64x64xf32>, vector<64x1xf32>, vector<64x1xf32> -> vector<64x1xf32>
    %cst_9 = arith.constant 3.906250e-03 : f32
    %11 = vector.broadcast %cst_9 : f32 to vector<64x1xf32>
    %12 = arith.mulf %8, %11 : vector<64x1xf32>
    %cst_10 = arith.constant 3.906250e-03 : f32
    %13 = vector.broadcast %cst_10 : f32 to vector<64x1xf32>
    %14 = arith.mulf %10, %13 : vector<64x1xf32>
    %15 = arith.mulf %12, %12 : vector<64x1xf32>
    %16 = arith.subf %14, %15 : vector<64x1xf32>
    %cst_11 = arith.constant 0.000000e+00 : f32
    %17 = vector.broadcast %cst_11 : f32 to vector<64x1xf32>
    %18 = arith.maximumf %16, %17 : vector<64x1xf32>
    %cst_12 = arith.constant 9.99999974E-6 : f32
    %19 = vector.broadcast %cst_12 : f32 to vector<64x1xf32>
    %20 = arith.addf %18, %19 : vector<64x1xf32>
    %21 = math.rsqrt %20 : vector<64x1xf32>
    %22 = vector.broadcast %12 : vector<64x1xf32> to vector<64x16xf32>
    %23 = arith.subf %1, %22 : vector<64x16xf32>
    %24 = vector.broadcast %21 : vector<64x1xf32> to vector<64x16xf32>
    %25 = arith.mulf %23, %24 : vector<64x16xf32>
    %26 = arith.truncf %25 : vector<64x16xf32> to vector<64x16xbf16>
    %c0_13 = arith.constant 0 : index
    %c0_14 = arith.constant 0 : index
    %27 = vector.load %arg4[%c0_13, %c0_14] : memref<16x256xbf16, #tpu.memory_space<vmem>>, vector<16x256xbf16>
    %cst_15 = arith.constant dense<0.000000e+00> : vector<64x256xf32>
    %28 = tpu.matmul %26, %27, %cst_15 {dimension_numbers = #tpu.dot_dimension_numbers<[1], [0], [0], [1], [0, 0, 1, 1], [], []>} : vector<64x16xbf16>, vector<16x256xbf16>, vector<64x256xf32> -> vector<64x256xf32>
    %c0_16 = arith.constant 0 : index
    %c0_17 = arith.constant 0 : index
    %29 = vector.load %arg5[%c0_16, %c0_17] : memref<512x64xbf16, #tpu.memory_space<vmem>>, vector<512x64xbf16>
    %30 = arith.truncf %28 : vector<64x256xf32> to vector<64x256xbf16>
    %cst_18 = arith.constant dense<0.000000e+00> : vector<512x256xf32>
    %31 = tpu.matmul %29, %30, %cst_18 {dimension_numbers = #tpu.dot_dimension_numbers<[1], [0], [0], [1], [0, 0, 1, 1], [], []>} : vector<512x64xbf16>, vector<64x256xbf16>, vector<512x256xf32> -> vector<512x256xf32>
    %c0_19 = arith.constant 0 : index
    %c0_20 = arith.constant 0 : index
    %32 = vector.load %arg6[%c0_19, %c0_20] : memref<512x1xf32, #tpu.memory_space<vmem>>, vector<512x1xf32>
    %33 = vector.broadcast %32 : vector<512x1xf32> to vector<512x256xf32>
    %34 = arith.addf %31, %33 : vector<512x256xf32>
    %c0_21 = arith.constant 0 : index
    %c0_22 = arith.constant 0 : index
    %c0_23 = arith.constant 0 : index
    %35 = vector.load %arg7[%c0_21, %c0_22, %c0_23] : memref<1x512x256xf32, #tpu.memory_space<vmem>>, vector<1x512x256xf32>
    %36 = vector.shape_cast %35 : vector<1x512x256xf32> to vector<512x256xf32>
    %37 = vector.shape_cast %34 : vector<512x256xf32> to vector<1x512x256xf32>
    tpu.vector_store %arg7[%c0_21, %c0_22, %c0_23], %37 {strides = array<i32>} : memref<1x512x256xf32, #tpu.memory_space<vmem>>, vector<1x512x256xf32>,
    return
  }
  func.func @transform_0(%arg0: i32, %arg1: i32) -> (i32, i32, i32) {
    %c0_i32 = arith.constant 0 : i32
    %c0_i32_0 = arith.constant 0 : i32
    %c0_i32_1 = arith.constant 0 : i32
    return %arg0, %c0_i32, %c0_i32_0 : i32, i32, i32
  }
  func.func @transform_1(%arg0: i32, %arg1: i32) -> (i32, i32) {
    %c0_i32 = arith.constant 0 : i32
    %c0_i32_0 = arith.constant 0 : i32
    %c0_i32_1 = arith.constant 0 : i32
    return %c0_i32, %c0_i32_0 : i32, i32
  }
  func.func @transform_2(%arg0: i32, %arg1: i32) -> (i32, i32) {
    %c0_i32 = arith.constant 0 : i32
    %c0_i32_0 = arith.constant 0 : i32
    %c0_i32_1 = arith.constant 0 : i32
    return %c0_i32, %c0_i32_0 : i32, i32
  }
  func.func @transform_3(%arg0: i32, %arg1: i32) -> (i32, i32) {
    %c0_i32 = arith.constant 0 : i32
    %c0_i32_0 = arith.constant 0 : i32
    return %arg1, %c0_i32 : i32, i32
  }
  func.func @transform_4(%arg0: i32, %arg1: i32) -> (i32, i32) {
    %c0_i32 = arith.constant 0 : i32
    %c0_i32_0 = arith.constant 0 : i32
    return %arg1, %c0_i32 : i32, i32
  }
  func.func @transform_5(%arg0: i32, %arg1: i32) -> (i32, i32, i32) {
    %c0_i32 = arith.constant 0 : i32
    %c0_i32_0 = arith.constant 0 : i32
    return %arg0, %arg1, %c0_i32 : i32, i32, i32
  }
}

</mosaic_0001>

<bundles_post_ra>
// kernel: tpu_custom_call.1
= control target key start
LH: loop header
LB: loop body
LE: loop exit
PB: predicated region body
PF: predicated region fallthrough
CT: control target
= control target key end

     0   :  { %10 = vsyncpa [#allocation3], 0  ;;  %s3415_s0 = inlined_call_operand.vmem [shape: f32[2,64,16], index: 0, kind: input, shape index: {}]   ;;  %s3416_s1 = inlined_call_operand.hbm [shape: f32[64,64], index: 1, kind: input, shape index: {}]   ;;  %s3417_s2 = inlined_call_operand.hbm [shape: bf16[16,256], index: 2, kind: input, shape index: {}]   ;;  %s3418_s3 = inlined_call_operand.vmem [shape: bf16[1024,64], index: 3, kind: input, shape index: {}]   ;;  %s3419_s4 = inlined_call_operand.vmem [shape: f32[1024,1], index: 4, kind: input, shape index: {}]   ;;  %s3420_s5 = inlined_call_operand.hbm [shape: f32[2,1024,256], index: 5, kind: output, shape index: {}]  }
   0x1   :  { %11 = vsyncpa [#allocation6], 0 }
   0x2   :  { %12 = vsyncpa [#allocation4], 0 }
   0x3   :  { %14 = vsyncpa [#allocation4 + $0x1], 0  ;;  %s2734_s18 = smov 0   ;;  %s2736_s19 = smov 0  }
   0x4   :  { %s2738_s20 = smov 0   ;;  %s2740_s21 = smov 0  }
   0x5   :  { %s2742_s22 = smov 0   ;;  %s2744_s23 = smov 0  }
   0x6   :  { %s2746_s24 = smov 0   ;;  %s2748_s25 = smov 0  }
   0x7 LB: > { %3424 = sst [smem:[#allocation11_spill]] %s2691_s24  ;;  %s2126_s26 = sadd.s32 4294967295, %s2695_s25   ;;  %s2695_s25 = sphi %s2748_s25, %s20_s25   ;;  %s2691_s24 = sphi %s2746_s24, %s3433_s24   ;;  %s2687_s23 = sphi %s2744_s23, %s3438_s23   ;;  %s2683_s22 = sphi %s2742_s22, %s3431_s22   ;;  %s2679_s21 = sphi %s2740_s21, %s3437_s21   ;;  %s2675_s20 = sphi %s2738_s20, %s3436_s20   ;;  %s2671_s19 = sphi %s2736_s19, %s3435_s19   ;;  %s2667_s18 = sphi %s2734_s18, %s3434_s18  }
   0x8   : > { %s2127_s27 = sadd.s32 4294967294, %s2695_s25   ;;  %s29_s28 = sadd.s32 1, %s2687_s23 }
   0x9   : > { %s32_s29 = sadd.s32 1, %s2691_s24  ;;  %p30_p0 = scmp.ge.s32.totalorder %s29_s28, 2 }
   0xa   : > { %s161_s30 = sadd.s32 1, %s2675_s20  ;;  %p171_p1 = scmp.ne.s32.totalorder %s2675_s20, %s2671_s19 }
   0xb   : > { %p172_p2 = scmp.eq.s32.totalorder %s2126_s26, 3  ;;  %s3440_s28 = smov (%p30_p0, %s29_s28), 0 }
   0xc   : > { %3425 = sst [smem:[#allocation12_spill]] %s3440_s28  ;;  %s3442_s29 = smov (!%p30_p0, %s32_s29), %s2691_s24 }
   0xd   : > { %s157_s6 = ssub.s32 %s2687_s23, %s3440_s28  ;;  %p2786_p3 = por %p172_p2, %p171_p1 }
   0xe   : > { %p34_p4 = scmp.ge.s32.totalorder %s3442_s29, 2  ;;  %p177_p5 = scmp.ne.s32.totalorder %s2671_s19, %s2667_s18 }
   0xf   : > { %p178_p6 = scmp.eq.s32.totalorder %s2127_s27, 3  ;;  %p2128_p7 = scmp.ge.s32.totalorder %s2695_s25, 1 }
  0x10   : > { %s3444_s29 = smov (%p34_p4, %s3442_s29), 0  ;;  %p185_p9 = scmp.lt.s32.totalorder %s2695_s25, 5 }
  0x11   : > { %3427 = sst [smem:[#allocation13_spill]] %s3444_s29  ;;  %p2795_p8 = por %p178_p6, %p177_p5 }
  0x12   : > { %s156_s9 = ssub.s32 %s2691_s24, %s3444_s29  ;;  %p2802_p10 = pnand %p2128_p7, %p185_p9 }
  0x13   : > { %s158_s10 = sor.u32 %s157_s6, %s156_s9  ;;  %p2806_p12 = scmp.eq.s32.totalorder %s2126_s26, 0 }
  0x14   : > { %p159_p11 = scmp.eq.s32.totalorder %s158_s10, 0  ;;  %p2427_p13 = pneg %p2802_p10 }
  0x15   : > { %s196_s15 = sshll.u32 %s3416_s1, 4  ;;  %s2697_s17 = smov [#allocation2]   ;;  %s197_s15 = int_to_ptr.hbm [resolvable:$true] %s196_s15 }
  0x16   : > { %s2816_s16 = scalar_select %p159_p11, %s2675_s20, %s161_s30  }
  0x17   : > { %s198_s27 = sshll.u32 %s2697_s17, 4  ;;  %p2428_p0 = pnand %p2806_p12, %p2427_p13  ;;  %s199_s27 = int_to_ptr.vmem [resolvable:$true] %s198_s27 }
  0x18   : > { %s2698_s6 = smov 128   ;;  %s2699_s26 = smov 8  }
  0x19   : > { %2430 = dma.hbm_to_vmem [thread:$0]  (!%p2428_p0), %s197_s15, 1024, %s199_s27, [#allocation3], %s2698_s6, %s2698_s6, %s2699_s26  }
  0x1a   : > { %s210_s29 = sshll.u32 %s3417_s2, 4  ;;  %s2700_s28 = smov [#allocation5]   ;;  %s211_s29 = int_to_ptr.hbm [resolvable:$true] %s210_s29 }
  0x1b   : > { %s212_s24 = sshll.u32 %s2700_s28, 4  ;;  %254 = sbr.rel (%p2802_p10) target bundleno = 1088 (0x440), region = 40  ;;  %s213_s24 = int_to_ptr.vmem [resolvable:$true] %s212_s24 }
  0x1c   : > { %2433 = dma.hbm_to_vmem [thread:$0]  (!%p2428_p0), %s211_s29, 256, %s213_s24, [#allocation6], %s2698_s6, %s2698_s6, %s2699_s26  }
  0x20   : > { %2654 = dma.done.wait (%p2806_p12), [#allocation3], 1024  }
  0x21   : > { %2656 = vsyncadd (%p2806_p12), [#allocation3], 4294966272 }
  0x22   : > { %2658 = dma.done.wait (%p2806_p12), [#allocation6], 256  }
  0x23   : > { %2660 = vsyncadd (%p2806_p12), [#allocation6], 4294967040  ;;  %p298_p1 = scmp.lt.s32.totalorder %s2683_s22, 1  ;;  %vm325_vm0 = vcmask 130048   ;;  %v382_v44 = vld [vmem:[#allocation2] sm:$0xff]  ;;  %vm390_vm1 = vcmask 523264  }
  0x24   : > { %v383_v48 = vld [vmem:[#allocation2 + $0x8] sm:$0xff]  ;;  %v384_v50 = vld [vmem:[#allocation2 + $0x10] sm:$0xff]  ;;  %v385_v51 = vld [vmem:[#allocation2 + $0x18] sm:$0xff]  ;;  %v2701_v56 = vmov 0   ;;  %s2138_s12 = sshll.u32 %s2679_s21, 6  ;;  %s295_s10 = sand.u32 1, %s2671_s19  }
  0x25   : > { %s299_s28 = scalar_select %p298_p1, %s2683_s22, 1  ;;  %v386_v52 = vld [vmem:[#allocation2 + $0x20] sm:$0xff]  ;;  %v387_v53 = vld [vmem:[#allocation2 + $0x28] sm:$0xff]  ;;  %v388_v54 = vld [vmem:[#allocation2 + $0x30] sm:$0xff]  ;;  %2514 = vset.pattern.permute.xlu1 %v2701_v56  ;;  %2515 = vset.pattern.permute.xlu2 %v2701_v56 }
  0x26   : > { %v389_v55 = vld [vmem:[#allocation2 + $0x38] sm:$0xff]  ;;  %2516 = vset.pattern.permute.xlu0 %v2701_v56  ;;  %p304_p2 = scmp.lt.s32.totalorder %s2138_s12, 127  ;;  %s2408_s29 = sshll.u32 %s2679_s21, 7 }
  0x27   : > { %s2373_s24 = sshll.u32 %s299_s28, 6  ;;  %s2135_s28 = sshll.u32 %s295_s10, 10 }
  0x28   : > { %s2838_s11 = scalar_lea.vmem %s3415_s0, %s2373_s24  ;;  %s3446_s12 = smov (!%p304_p2, %s2138_s12), 127 }
  0x29   : > { %v2841_v0 = vld [vmem:[%s2838_s11 + $0x38] sm:$0xff]  ;;  %v2844_v1 = vld [vmem:[%s2838_s11 + $0x28] sm:$0xff]  ;;  %v2847_v2 = vld [vmem:[%s2838_s11 + $0x20] sm:$0xff]  ;;  %s2141_s13 = sshll.u32 %s3446_s12, 3  ;;  %s2139_s27 = sshll.u32 %s3446_s12, 2 }
  0x2a   : > { %v347_v3 = vsel %vm325_vm0, %v2841_v0, 0.0  ;;  %v341_v4 = vsel %vm325_vm0, %v2844_v1, 0.0  ;;  %v338_v5 = vsel %vm325_vm0, %v2847_v2, 0.0  ;;  %v2856_v6 = vld [vmem:[%s2838_s11 + $0x30] sm:$0xff]  ;;  %v357_v7 = vmul.f32 %v2841_v0, %v2841_v0  ;;  %v2869_v13 = vld [vmem:[%s2838_s11 + $0x18] sm:$0xff]  ;;  %v2883_v20 = vld [vmem:[%s2838_s11 + $0x8] sm:$0xff]  ;;  %s2932_s17 = scalar_lea.vmem %s3419_s4, %s2141_s13  ;;  %s3018_s9 = scalar_lea.vmem %s3418_s3, %s2139_s27 }
  0x2b   : > { %348 = vadd.xlane.f32.xlu0 %v347_v3  ;;  %342 = vadd.xlane.f32.xlu1 %v341_v4  ;;  %v356_v8 = vmul.f32 %v2856_v6, %v2856_v6  ;;  %v344_v9 = vsel %vm325_vm0, %v2856_v6, 0.0  ;;  %v355_v12 = vmul.f32 %v2844_v1, %v2844_v1  ;;  %v354_v14 = vmul.f32 %v2847_v2, %v2847_v2  ;;  %v2880_v19 = vld [vmem:[%s2838_s11 + $0x10] sm:$0xff]  ;;  %v2893_v25 = vld [vmem:[%s2838_s11] sm:$0xff]  ;;  %s3131_s24 = scalar_lea.vmem [#allocation7], %s2135_s28  ;;  %s2369_s30 = sshll.u32 %s2683_s22, 8 }
  0x2c   : > { %339 = vadd.xlane.f32.xlu2 %v338_v5  ;;  %v379_v10 = vsel %vm325_vm0, %v357_v7, 0.0  ;;  %v335_v16 = vsel %vm325_vm0, %v2869_v13, 0.0  ;;  %v353_v18 = vmul.f32 %v2869_v13, %v2869_v13  ;;  %v332_v22 = vsel %vm325_vm0, %v2880_v19, 0.0  ;;  %s1998_s11 = sadd.s32 %s2408_s29, %s2369_s30  ;;  %s2001_s21 = sshll.u32 %s3131_s24, 4  ;;  %s2002_s21 = int_to_ptr.vmem [resolvable:$true] %s2001_s21 }
  0x2d   : > { %v376_v11 = vsel %vm325_vm0, %v356_v8, 0.0  ;;  %v373_v15 = vsel %vm325_vm0, %v355_v12, 0.0  ;;  %v370_v17 = vsel %vm325_vm0, %v354_v14, 0.0  ;;  %v329_v23 = vsel %vm325_vm0, %v2883_v20, 0.0  ;;  %s2370_s12 = sshll.u32 %s1998_s11, 3  ;;  %s2613_s28 = scalar_lea.hbm %s3420_s5, 4096 }
  0x2e   : > { %v367_v21 = vsel %vm325_vm0, %v353_v18, 0.0  ;;  %v352_v24 = vmul.f32 %v2880_v19, %v2880_v19  ;;  %v351_v26 = vmul.f32 %v2883_v20, %v2883_v20  ;;  %v326_v28 = vsel %vm325_vm0, %v2893_v25, 0.0  ;;  %s2000_s15 = scalar_lea.hbm %s3420_s5, %s2370_s12 }
  0x2f   : > { %v350_v30 = vmul.f32 %v2893_v25, %v2893_v25  ;;  %s2003_s22 = sshll.u32 %s2000_s15, 4  ;;  %s2004_s22 = int_to_ptr.hbm [resolvable:$true] %s2003_s22 }
  0x30   : > { %v364_v27 = vsel %vm325_vm0, %v352_v24, 0.0  ;;  %v361_v29 = vsel %vm325_vm0, %v351_v26, 0.0  ;;  %s2607_s27 = sshra.s32 %s2004_s22, 4  ;;  %s2608_s27 = int_to_ptr.hbm [resolvable:$true] %s2607_s27 }
  0x31   : > { %v358_v31 = vsel %vm325_vm0, %v350_v30, 0.0  ;;  %s2609_s6 = scalar_lea.hbm %s2608_s27, 1024  ;;  %p2614_p7 = scmp.lt.s32.totalorder %s2608_s27, %s3420_s5 }
  0x32   : > { %p2610_p4 = scmp.ne.s32.totalorder %s2608_s27, %s2609_s6  ;;  %p2615_p9 = scmp.lt.s32.totalorder %s2613_s28, %s2609_s6 }
  0x33   : > { %345 = vadd.xlane.f32.xlu0 %v344_v9  ;;  %380 = vadd.xlane.f32.xlu1 %v379_v10 }
  0x34   : > { %377 = vadd.xlane.f32.xlu2 %v376_v11  ;;  %p2611_p5 = pnand %p2610_p4, %p2786_p3  ;;  %p2616_p10 = por %p2615_p9, %p2614_p7 }
  0x36   : > { %p2612_p6 = pneg %p2611_p5 }
  0x38   : > { %p2617_p11 = pnand %p2616_p10, %p2612_p6 }
  0x3b   : > { %374 = vadd.xlane.f32.xlu0 %v373_v15  ;;  %336 = vadd.xlane.f32.xlu1 %v335_v16 }
  0x3c   : > { %371 = vadd.xlane.f32.xlu2 %v370_v17 }
  0x43   : > { %368 = vadd.xlane.f32.xlu1 %v367_v21  ;;  %333 = vadd.xlane.f32.xlu0 %v332_v22 }
  0x44   : > { %330 = vadd.xlane.f32.xlu2 %v329_v23 }
  0x4b   : > { %365 = vadd.xlane.f32.xlu0 %v364_v27  ;;  %327 = vadd.xlane.f32.xlu1 %v326_v28 }
  0x4c   : > { %362 = vadd.xlane.f32.xlu2 %v361_v29 }
  0x53   : > { %359 = vadd.xlane.f32.xlu0 %v358_v31 }
  0x9e   : > { %v349_v32 = vpop.xlane.xlu0 %348  ;;  %v343_v33 = vpop.xlane.xlu1 %342 }
  0x9f   : > { %423 = vmatpush.msra.mxu0 %v349_v32  ;;  %v340_v34 = vpop.xlane.xlu2 %339 }
  0xa6   : > { %v346_v35 = vpop.xlane.xlu0 %345  ;;  %v381_v36 = vpop.xlane.xlu1 %380 }
  0xa7   : > { %424 = vmatpush.msra.mxu0 %v346_v35  ;;  %464 = vmatpush.msra.mxu1 %v381_v36  ;;  %v378_v37 = vpop.xlane.xlu2 %377 }
  0xa9   : > { %425 = vmatpush.msra.mxu0 %v343_v33  ;;  %465 = vmatpush.msra.mxu1 %v378_v37 }
  0xab   : > { %426 = vmatpush.msra.mxu0 %v340_v34 }
  0xae   : > { %v375_v38 = vpop.xlane.xlu0 %374  ;;  %v337_v39 = vpop.xlane.xlu1 %336 }
  0xaf   : > { %466 = vmatpush.msra.mxu1 %v375_v38  ;;  %v372_v40 = vpop.xlane.xlu2 %371  ;;  %427 = vmatpush.msra.mxu0 %v337_v39 }
  0xb1   : > { %467 = vmatpush.msra.mxu1 %v372_v40 }
  0xb6   : > { %v369_v41 = vpop.xlane.xlu1 %368  ;;  %v334_v42 = vpop.xlane.xlu0 %333 }
  0xb7   : > { %428 = vmatpush.msra.mxu0 %v334_v42  ;;  %v331_v43 = vpop.xlane.xlu2 %330  ;;  %468 = vmatpush.msra.mxu1 %v369_v41 }
  0xb9   : > { %429 = vmatpush.msra.mxu0 %v331_v43 }
  0xbe   : > { %v366_v45 = vpop.xlane.xlu0 %365  ;;  %v328_v46 = vpop.xlane.xlu1 %327 }
  0xbf   : > { %430 = vmatpush.msra.mxu0 %v328_v46  ;;  %469 = vmatpush.msra.mxu1 %v366_v45  ;;  %v363_v47 = vpop.xlane.xlu2 %362 }
  0xc0   : > { %2142 = vmatmul.msk.f32.vlgmr.msra.gmra.mxu0 %vm390_vm1, %v382_v44 }
  0xc1   : > { %470 = vmatpush.msra.mxu1 %v363_v47 }
  0xc6   : > { %v360_v49 = vpop.xlane.xlu0 %359 }
  0xc7   : > { %471 = vmatpush.msra.mxu1 %v360_v49 }
  0xc8   : > { %2143 = vmatmul.msk.f32.gmra.mxu0 %vm390_vm1, %v383_v48  ;;  %2150 = vmatmul.msk.f32.vlgmr.msra.gmra.mxu1 %vm390_vm1, %v382_v44 }
  0xd0   : > { %2144 = vmatmul.msk.f32.gmra.mxu0 %vm390_vm1, %v384_v50  ;;  %2151 = vmatmul.msk.f32.gmra.mxu1 %vm390_vm1, %v383_v48 }
  0xd8   : > { %2145 = vmatmul.msk.f32.gmra.mxu0 %vm390_vm1, %v385_v51  ;;  %2152 = vmatmul.msk.f32.gmra.mxu1 %vm390_vm1, %v384_v50 }
  0xe0   : > { %2146 = vmatmul.msk.f32.gmra.mxu0 %vm390_vm1, %v386_v52  ;;  %2153 = vmatmul.msk.f32.gmra.mxu1 %vm390_vm1, %v385_v51 }
  0xe8   : > { %2147 = vmatmul.msk.f32.gmra.mxu0 %vm390_vm1, %v387_v53  ;;  %2154 = vmatmul.msk.f32.gmra.mxu1 %vm390_vm1, %v386_v52 }
  0xf0   : > { %2148 = vmatmul.msk.f32.gmra.mxu0 %vm390_vm1, %v388_v54  ;;  %2155 = vmatmul.msk.f32.gmra.mxu1 %vm390_vm1, %v387_v53 }
  0xf8   : > { %2156 = vmatmul.msk.f32.gmra.mxu1 %vm390_vm1, %v388_v54  ;;  %2149 = vmatmul.msk.f32.gmra.mxu0 %vm390_vm1, %v389_v55 }
 0x100   : > { %2157 = vmatmul.msk.f32.gmra.mxu1 %vm390_vm1, %v389_v55 }
 0x13d   : > { %v432_v57 = vpop.f32.mrf.mxu0 }
 0x13e   : > { %v497_v58 = vmul.f32 0.00390625, %v432_v57 }
 0x140   : > { %627 = vperm.xlu1 %2514, %v497_v58   ;;  %v513_v59 = vmul.f32 %v497_v58, %v497_v58 }
 0x145   : > { %v435_v60 = vpop.f32.mrf.mxu0  ;;  %v473_v61 = vpop.f32.mrf.mxu1 }
 0x146   : > { %v498_v62 = vmul.f32 0.00390625, %v435_v60  ;;  %v505_v63 = vmul.f32 0.00390625, %v473_v61 }
 0x148   : > { %v521_v3 = vsub.f32 %v505_v63, %v513_v59  ;;  %632 = vperm.xlu2 %2515, %v498_v62   ;;  %v514_v5 = vmul.f32 %v498_v62, %v498_v62 }
 0x14a   : > { %v529_v4 = vmax.f32 %v521_v3, 0.0 }
 0x14c   : > { %v537_v7 = vadd.f32 1e-05, %v529_v4 }
 0x14d   : > { %v438_v8 = vpop.f32.mrf.mxu0  ;;  %v476_v9 = vpop.f32.mrf.mxu1 }
 0x14e   : > { %2517 = vrsqrt.f32 %v537_v7  ;;  %v499_v10 = vmul.f32 0.00390625, %v438_v8  ;;  %v506_v11 = vmul.f32 0.00390625, %v476_v9  ;;  %vm551_vm3 = vweird.f32 %v537_v7 }
 0x150   : > { %v522_v12 = vsub.f32 %v506_v11, %v514_v5  ;;  %637 = vperm.xlu1 %2514, %v499_v10   ;;  %v515_v16 = vmul.f32 %v499_v10, %v499_v10 }
 0x152   : > { %v530_v14 = vmax.f32 %v522_v12, 0.0 }
 0x154   : > { %v2518_v15 = vpop.eup %2517  ;;  %v538_v17 = vadd.f32 1e-05, %v530_v14 }
 0x155   : > { %v546_v18 = vmul.f32 %v2518_v15, %v537_v7  ;;  %v441_v21 = vpop.f32.mrf.mxu0  ;;  %v479_v22 = vpop.f32.mrf.mxu1  ;;  %vm552_vm2 = vweird.f32 %v2518_v15 }
 0x156   : > { %2519 = vrsqrt.f32 %v538_v17  ;;  %v507_v23 = vmul.f32 0.00390625, %v479_v22  ;;  %v500_v26 = vmul.f32 0.00390625, %v441_v21  ;;  %vm553_vm4 = vmor %vm551_vm3, %vm552_vm2  ;;  %vm561_vm6 = vweird.f32 %v538_v17 }
 0x157   : > { %v547_v24 = vmul.f32 %v2518_v15, %v546_v18 }
 0x158   : > { %v523_v27 = vsub.f32 %v507_v23, %v515_v16  ;;  %v516_v32 = vmul.f32 %v500_v26, %v500_v26 }
 0x159   : > { %v548_v28 = vmul.f32 0.5, %v547_v24 }
 0x15a   : > { %v531_v29 = vmax.f32 %v523_v27, 0.0 }
 0x15b   : > { %v549_v30 = vsub.f32 1.5, %v548_v28 }
 0x15c   : > { %v2520_v31 = vpop.eup %2519  ;;  %v539_v33 = vadd.f32 1e-05, %v531_v29 }
 0x15d   : > { %v556_v34 = vmul.f32 %v2520_v31, %v538_v17  ;;  %v444_v35 = vpop.f32.mrf.mxu0  ;;  %v482_v36 = vpop.f32.mrf.mxu1  ;;  %v550_v37 = vmul.f32 %v2518_v15, %v549_v30  ;;  %vm562_vm5 = vweird.f32 %v2520_v31 }
 0x15e   : > { %2521 = vrsqrt.f32 %v539_v33  ;;  %v508_v38 = vmul.f32 0.00390625, %v482_v36  ;;  %v2920_v41 = vmul.f32 0.00390625, %v444_v35  ;;  %vm563_vm7 = vmor %vm561_vm6, %vm562_vm5  ;;  %vm571_vm9 = vweird.f32 %v539_v33 }
 0x15f   : > { %v554_v39 = vsel %vm553_vm4, %v2518_v15, %v550_v37  ;;  %v557_v40 = vmul.f32 %v2520_v31, %v556_v34 }
 0x160   : > { %v524_v42 = vsub.f32 %v508_v38, %v516_v32  ;;  %675 = vperm.xlu0 %2516, %v554_v39   ;;  %v517_v47 = vmul.f32 %v2920_v41, %v2920_v41 }
 0x161   : > { %v558_v43 = vmul.f32 0.5, %v557_v40 }
 0x162   : > { %v532_v44 = vmax.f32 %v524_v42, 0.0 }
 0x163   : > { %v559_v45 = vsub.f32 1.5, %v558_v43 }
 0x164   : > { %v2522_v46 = vpop.eup %2521  ;;  %v540_v48 = vadd.f32 1e-05, %v532_v44 }
 0x165   : > { %v566_v49 = vmul.f32 %v2522_v46, %v539_v33  ;;  %v447_v50 = vpop.f32.mrf.mxu0  ;;  %v485_v51 = vpop.f32.mrf.mxu1  ;;  %v560_v52 = vmul.f32 %v2520_v31, %v559_v45  ;;  %vm572_vm8 = vweird.f32 %v2522_v46 }
 0x166   : > { %2523 = vrsqrt.f32 %v540_v48  ;;  %v502_v53 = vmul.f32 0.00390625, %v447_v50  ;;  %v509_v54 = vmul.f32 0.00390625, %v485_v51  ;;  %vm573_vm10 = vmor %vm571_vm9, %vm572_vm8  ;;  %vm581_vm12 = vweird.f32 %v540_v48 }
 0x167   : > { %v564_v55 = vsel %vm563_vm7, %v2520_v31, %v560_v52  ;;  %v567_v56 = vmul.f32 %v2522_v46, %v566_v49 }
 0x168   : > { %v525_v57 = vsub.f32 %v509_v54, %v517_v47  ;;  %680 = vperm.xlu2 %2515, %v564_v55   ;;  %652 = vperm.xlu0 %2516, %v502_v53   ;;  %v518_v62 = vmul.f32 %v502_v53, %v502_v53 }
 0x169   : > { %v568_v58 = vmul.f32 0.5, %v567_v56 }
 0x16a   : > { %v533_v59 = vmax.f32 %v525_v57, 0.0 }
 0x16b   : > { %v569_v60 = vsub.f32 1.5, %v568_v58 }
 0x16c   : > { %v2524_v61 = vpop.eup %2523  ;;  %v541_v63 = vadd.f32 1e-05, %v533_v59  ;;  %v879_v59 = vld [vmem:[%s2932_s17] sm:$0xff] }
 0x16d   : > { %v576_v3 = vmul.f32 %v2524_v61, %v540_v48  ;;  %v450_v4 = vpop.f32.mrf.mxu0  ;;  %v488_v5 = vpop.f32.mrf.mxu1  ;;  %v570_v7 = vmul.f32 %v2522_v46, %v569_v60  ;;  %vm582_vm11 = vweird.f32 %v2524_v61 }
 0x16e   : > { %2525 = vrsqrt.f32 %v541_v63  ;;  %v503_v8 = vmul.f32 0.00390625, %v450_v4  ;;  %v510_v9 = vmul.f32 0.00390625, %v488_v5  ;;  %vm583_vm13 = vmor %vm581_vm12, %vm582_vm11  ;;  %vm591_vm15 = vweird.f32 %v541_v63  ;;  %v882_v4 = vld [vmem:[%s2932_s17 + $0x18] sm:$0xff] }
 0x16f   : > { %v574_v10 = vsel %vm573_vm10, %v2522_v46, %v570_v7  ;;  %v577_v11 = vmul.f32 %v2524_v61, %v576_v3  ;;  %v880_v3 = vld [vmem:[%s2932_s17 + $0x8] sm:$0xff] }
 0x170   : > { %v526_v12 = vsub.f32 %v510_v9, %v518_v62  ;;  %685 = vperm.xlu1 %2514, %v574_v10   ;;  %642 = vperm.xlu2 %2515, %v500_v26   ;;  %v519_v18 = vmul.f32 %v503_v8, %v503_v8  ;;  %v885_v9 = vld [vmem:[%s2932_s17 + $0x30] sm:$0xff] }
 0x171   : > { %657 = vperm.xlu0 %2516, %v503_v8   ;;  %v578_v14 = vmul.f32 0.5, %v577_v11  ;;  %v883_v8 = vld [vmem:[%s2932_s17 + $0x20] sm:$0xff]  ;;  %v881_v10 = vld [vmem:[%s2932_s17 + $0x10] sm:$0xff]  ;;  %v886_v11 = vld [vmem:[%s2932_s17 + $0x38] sm:$0xff] }
 0x172   : > { %v534_v15 = vmax.f32 %v526_v12, 0.0  ;;  %v888_v12 = vld [vmem:[%s2932_s17 + $0x48] sm:$0xff] }
 0x173   : > { %v579_v16 = vsub.f32 1.5, %v578_v14  ;;  %v884_v14 = vld [vmem:[%s2932_s17 + $0x28] sm:$0xff] }
 0x174   : > { %v2526_v17 = vpop.eup %2525  ;;  %v542_v21 = vadd.f32 1e-05, %v534_v15  ;;  %v889_v15 = vld [vmem:[%s2932_s17 + $0x50] sm:$0xff] }
 0x175   : > { %v586_v22 = vmul.f32 %v2526_v17, %v541_v63  ;;  %v491_v23 = vpop.f32.mrf.mxu1  ;;  %v580_v24 = vmul.f32 %v2524_v61, %v579_v16  ;;  %v453_v27 = vpop.f32.mrf.mxu0  ;;  %vm592_vm14 = vweird.f32 %v2526_v17  ;;  %v891_v16 = vld [vmem:[%s2932_s17 + $0x60] sm:$0xff] }
 0x176   : > { %2527 = vrsqrt.f32 %v542_v21  ;;  %v511_v28 = vmul.f32 0.00390625, %v491_v23  ;;  %v504_v31 = vmul.f32 0.00390625, %v453_v27  ;;  %vm593_vm2 = vmor %vm591_vm15, %vm592_vm14  ;;  %vm601_vm4 = vweird.f32 %v542_v21 }
 0x177   : > { %v584_v29 = vsel %vm583_vm13, %v2524_v61, %v580_v24  ;;  %v587_v30 = vmul.f32 %v2526_v17, %v586_v22  ;;  %v2374_v22 = vld [vmem:[#allocation5 + $0x4] sm:$0xf]  ;;  %v2162_v24 = vld [vmem:[#allocation5 + $0x8] sm:$0xf0] }
 0x178   : > { %v527_v26 = vsub.f32 %v511_v28, %v519_v18  ;;  %690 = vperm.xlu2 %2515, %v584_v29   ;;  %647 = vperm.xlu1 %2514, %v2920_v41   ;;  %v520_v37 = vmul.f32 %v504_v31, %v504_v31  ;;  %v2160_v18 = vld [vmem:[#allocation5] sm:$0xf]  ;;  %v2165_v27 = vor.u32 %v2374_v22, %v2162_v24  ;;  %v892_v28 = vld [vmem:[%s2932_s17 + $0x68] sm:$0xff]  ;;  %v894_v29 = vld [vmem:[%s2932_s17 + $0x78] sm:$0xff] }
 0x179   : > { %v588_v32 = vmul.f32 0.5, %v587_v30  ;;  %v890_v30 = vld [vmem:[%s2932_s17 + $0x58] sm:$0xff]  ;;  %v917_v22 = vld [vmem:[%s2932_s17 + $0x130] sm:$0xff]  ;;  %v920_v24 = vld [vmem:[%s2932_s17 + $0x148] sm:$0xff] }
 0x17a   : > { %v535_v33 = vmax.f32 %v527_v26, 0.0  ;;  %785 = vmatpush.bf16.msra.mxu3 %v2165_v27  ;;  %v895_v26 = vld [vmem:[%s2932_s17 + $0x80] sm:$0xff] }
 0x17b   : > { %v589_v34 = vsub.f32 1.5, %v588_v32  ;;  %v893_v32 = vld [vmem:[%s2932_s17 + $0x70] sm:$0xff] }
 0x17c   : > { %v2528_v35 = vpop.eup %2527  ;;  %v543_v36 = vadd.f32 1e-05, %v535_v33 }
 0x17d   : > { %v596_v38 = vmul.f32 %v2528_v35, %v542_v21  ;;  %v494_v39 = vpop.f32.mrf.mxu1  ;;  %v590_v40 = vmul.f32 %v2526_v17, %v589_v34  ;;  %vm602_vm3 = vweird.f32 %v2528_v35  ;;  %v2375_v21 = vld [vmem:[#allocation5 + $0x4] sm:$0xf0]  ;;  %v898_v34 = vld [vmem:[%s2932_s17 + $0x98] sm:$0xff] }
 0x17e   : > { %2529 = vrsqrt.f32 %v543_v36  ;;  %v512_v42 = vmul.f32 0.00390625, %v494_v39  ;;  %vm603_vm5 = vmor %vm601_vm4, %vm602_vm3  ;;  %vm611_vm7 = vweird.f32 %v543_v36  ;;  %v2161_v23 = vor.u32 %v2375_v21, %v2160_v18  ;;  %v903_v39 = vld [vmem:[%s2932_s17 + $0xc0] sm:$0xff]  ;;  %v921_v21 = vld [vmem:[%s2932_s17 + $0x150] sm:$0xff] }
 0x17f   : > { %v594_v43 = vsel %vm593_vm2, %v2526_v17, %v590_v40  ;;  %v597_v44 = vmul.f32 %v2528_v35, %v596_v38  ;;  %v887_v17 = vld [vmem:[%s2932_s17 + $0x40] sm:$0xff]  ;;  %v901_v38 = vld [vmem:[%s2932_s17 + $0xb0] sm:$0xff] }
 0x180   : > { %v528_v41 = vsub.f32 %v512_v42, %v520_v37  ;;  %695 = vperm.xlu2 %2515, %v594_v43   ;;  %756 = vmatpush.bf16.msra.mxu2 %v2161_v23  ;;  %v899_v42 = vld [vmem:[%s2932_s17 + $0xa0] sm:$0xff]  ;;  %v924_v23 = vld [vmem:[%s2932_s17 + $0x168] sm:$0xff] }
 0x181   : > { %v598_v45 = vmul.f32 0.5, %v597_v44  ;;  %v919_v18 = vld [vmem:[%s2932_s17 + $0x140] sm:$0xff] }
 0x182   : > { %v536_v46 = vmax.f32 %v528_v41, 0.0 }
 0x183   : > { %v599_v47 = vsub.f32 1.5, %v598_v45 }
 0x184   : > { %v2530_v48 = vpop.eup %2529  ;;  %v544_v49 = vadd.f32 1e-05, %v536_v46 }
 0x185   : > { %v606_v50 = vmul.f32 %v2530_v48, %v543_v36  ;;  %v600_v51 = vmul.f32 %v2528_v35, %v599_v47  ;;  %vm612_vm6 = vweird.f32 %v2530_v48  ;;  %v896_v36 = vld [vmem:[%s2932_s17 + $0x88] sm:$0xff] }
 0x186   : > { %2531 = vrsqrt.f32 %v544_v49  ;;  %vm613_vm8 = vmor %vm611_vm7, %vm612_vm6  ;;  %vm621_vm10 = vweird.f32 %v544_v49 }
 0x187   : > { %v604_v52 = vsel %vm603_vm5, %v2528_v35, %v600_v51  ;;  %v607_v53 = vmul.f32 %v2530_v48, %v606_v50  ;;  %v900_v35 = vld [vmem:[%s2932_s17 + $0xa8] sm:$0xff]  ;;  %v902_v51 = vld [vmem:[%s2932_s17 + $0xb8] sm:$0xff] }
 0x188   : > { %700 = vperm.xlu1 %2514, %v604_v52   ;;  %662 = vperm.xlu2 %2515, %v504_v31   ;;  %v897_v31 = vld [vmem:[%s2932_s17 + $0x90] sm:$0xff] }
 0x189   : > { %v608_v54 = vmul.f32 0.5, %v607_v53  ;;  %v909_v52 = vld [vmem:[%s2932_s17 + $0xf0] sm:$0xff] }
 0x18a   : > { %v905_v53 = vld [vmem:[%s2932_s17 + $0xd0] sm:$0xff] }
 0x18b   : > { %v609_v55 = vsub.f32 1.5, %v608_v54 }
 0x18c   : > { %v2532_v56 = vpop.eup %2531 }
 0x18d   : > { %v616_v57 = vmul.f32 %v2532_v56, %v544_v49  ;;  %v610_v58 = vmul.f32 %v2530_v48, %v609_v55  ;;  %vm622_vm9 = vweird.f32 %v2532_v56  ;;  %v906_v49 = vld [vmem:[%s2932_s17 + $0xd8] sm:$0xff] }
 0x18e   : > { %vm623_vm11 = vmor %vm621_vm10, %vm622_vm9 }
 0x18f   : > { %v614_v60 = vsel %vm613_vm8, %v2530_v48, %v610_v58  ;;  %v617_v61 = vmul.f32 %v2532_v56, %v616_v57  ;;  %v904_v48 = vld [vmem:[%s2932_s17 + $0xc8] sm:$0xff] }
 0x190   : > { %705 = vperm.xlu1 %2514, %v614_v60   ;;  %945 = vperm.xlu2 %2515, %v879_v59  }
 0x191   : > { %v618_v62 = vmul.f32 0.5, %v617_v61  ;;  %v910_v61 = vld [vmem:[%s2932_s17 + $0xf8] sm:$0xff] }
 0x193   : > { %v619_v63 = vsub.f32 1.5, %v618_v62  ;;  %v912_v62 = vld [vmem:[%s2932_s17 + $0x108] sm:$0xff] }
 0x195   : > { %v620_v5 = vmul.f32 %v2532_v56, %v619_v63  ;;  %v908_v63 = vld [vmem:[%s2932_s17 + $0xe8] sm:$0xff] }
 0x197   : > { %v624_v7 = vsel %vm623_vm11, %v2532_v56, %v620_v5  ;;  %v916_v5 = vld [vmem:[%s2932_s17 + $0x128] sm:$0xff] }
 0x198   : > { %950 = vperm.xlu1 %2514, %v880_v3   ;;  %960 = vperm.xlu2 %2515, %v882_v4   ;;  %v911_v3 = vld [vmem:[%s2932_s17 + $0x100] sm:$0xff] }
 0x199   : > { %710 = vperm.xlu0 %2516, %v624_v7   ;;  %v918_v7 = vld [vmem:[%s2932_s17 + $0x138] sm:$0xff] }
 0x1a0   : > { %965 = vperm.xlu1 %2514, %v883_v8   ;;  %975 = vperm.xlu2 %2515, %v885_v9   ;;  %v914_v9 = vld [vmem:[%s2932_s17 + $0x118] sm:$0xff] }
 0x1a1   : > { %955 = vperm.xlu0 %2516, %v881_v10  }
 0x1a2   : > { %v633_v33 = vpop.permute.xlu2 %632 }
 0x1a3   : > { %v666_v43 = vsub.f32 %v2883_v20, %v633_v33 }
 0x1a8   : > { %980 = vperm.xlu1 %2514, %v886_v11   ;;  %990 = vperm.xlu2 %2515, %v888_v12  }
 0x1a9   : > { %970 = vperm.xlu0 %2516, %v884_v14  }
 0x1b0   : > { %995 = vperm.xlu1 %2514, %v889_v15   ;;  %1005 = vperm.xlu2 %2515, %v891_v16  }
 0x1b1   : > { %985 = vperm.xlu0 %2516, %v887_v17  }
 0x1b2   : > { %v628_v40 = vpop.permute.xlu1 %627 }
 0x1b3   : > { %v665_v44 = vsub.f32 %v2893_v25, %v628_v40  ;;  %v907_v25 = vld [vmem:[%s2932_s17 + $0xe0] sm:$0xff]  ;;  %v929_v40 = vld [vmem:[%s2932_s17 + $0x190] sm:$0xff] }
 0x1b8   : > { %1010 = vperm.xlu1 %2514, %v892_v28   ;;  %1020 = vperm.xlu2 %2515, %v894_v29  }
 0x1b9   : > { %1000 = vperm.xlu0 %2516, %v890_v30  }
 0x1c0   : > { %1025 = vperm.xlu1 %2514, %v895_v26   ;;  %1035 = vperm.xlu2 %2515, %v897_v31  }
 0x1c1   : > { %1015 = vperm.xlu0 %2516, %v893_v32  }
 0x1c2   : > { %v681_v37 = vpop.permute.xlu2 %680  ;;  %v638_v20 = vpop.permute.xlu1 %637 }
 0x1c3   : > { %v714_v45 = vmul.f32 %v681_v37, %v666_v43  ;;  %v667_v55 = vsub.f32 %v2880_v19, %v638_v20  ;;  %v915_v19 = vld [vmem:[%s2932_s17 + $0x120] sm:$0xff]  ;;  %v926_v37 = vld [vmem:[%s2932_s17 + $0x178] sm:$0xff]  ;;  %v936_v43 = vld [vmem:[%s2932_s17 + $0x1c8] sm:$0xff] }
 0x1c8   : > { %1040 = vperm.xlu1 %2514, %v898_v34   ;;  %1050 = vperm.xlu2 %2515, %v900_v35   ;;  %v925_v34 = vld [vmem:[%s2932_s17 + $0x170] sm:$0xff]  ;;  %v927_v35 = vld [vmem:[%s2932_s17 + $0x180] sm:$0xff] }
 0x1c9   : > { %1030 = vperm.xlu0 %2516, %v896_v36   ;;  %v923_v36 = vld [vmem:[%s2932_s17 + $0x160] sm:$0xff] }
 0x1ca   : > { %v643_v50 = vpop.permute.xlu2 %642 }
 0x1cb   : > { %v668_v56 = vsub.f32 %v2869_v13, %v643_v50  ;;  %v913_v13 = vld [vmem:[%s2932_s17 + $0x110] sm:$0xff] }
 0x1cc   : > { %v941_v50 = vld [vmem:[%s2932_s17 + $0x1f0] sm:$0xff] }
 0x1d0   : > { %1055 = vperm.xlu1 %2514, %v901_v38   ;;  %1065 = vperm.xlu2 %2515, %v903_v39   ;;  %v931_v38 = vld [vmem:[%s2932_s17 + $0x1a0] sm:$0xff]  ;;  %v933_v39 = vld [vmem:[%s2932_s17 + $0x1b0] sm:$0xff] }
 0x1d1   : > { %1045 = vperm.xlu0 %2516, %v899_v42   ;;  %v934_v42 = vld [vmem:[%s2932_s17 + $0x1b8] sm:$0xff] }
 0x1d2   : > { %v676_v41 = vpop.permute.xlu0 %675  ;;  %v691_v54 = vpop.permute.xlu2 %690 }
 0x1d3   : > { %v713_v46 = vmul.f32 %v676_v41, %v665_v44  ;;  %v716_v58 = vmul.f32 %v691_v54, %v668_v56  ;;  %v932_v44 = vld [vmem:[%s2932_s17 + $0x1a8] sm:$0xff]  ;;  %v937_v41 = vld [vmem:[%s2932_s17 + $0x1d0] sm:$0xff] }
 0x1d5   : > { %v721_v47 = vpack.c.bf16 %v714_v45, %v713_v46  ;;  %v939_v45 = vld [vmem:[%s2932_s17 + $0x1e0] sm:$0xff] }
 0x1d6   : > { %v935_v46 = vld [vmem:[%s2932_s17 + $0x1c0] sm:$0xff] }
 0x1d7   : > { %2166 = vmatmul.msk.bf16.vlgmr.msra.gmra.mxu2 %vm325_vm0, %v721_v47  ;;  %2170 = vmatmul.msk.bf16.vlgmr.msra.gmra.mxu3 %vm325_vm0, %v721_v47  ;;  %v940_v47 = vld [vmem:[%s2932_s17 + $0x1e8] sm:$0xff] }
 0x1d8   : > { %1070 = vperm.xlu1 %2514, %v904_v48   ;;  %1080 = vperm.xlu2 %2515, %v906_v49   ;;  %v942_v48 = vld [vmem:[%s2932_s17 + $0x1f8] sm:$0xff] }
 0x1d9   : > { %1060 = vperm.xlu0 %2516, %v902_v51   ;;  %v938_v49 = vld [vmem:[%s2932_s17 + $0x1d8] sm:$0xff] }
 0x1da   : > { %v653_v8 = vpop.permute.xlu0 %652  ;;  %v696_v12 = vpop.permute.xlu2 %695 }
 0x1db   : > { %v670_v11 = vsub.f32 %v2844_v1, %v653_v8 }
 0x1e0   : > { %1085 = vperm.xlu1 %2514, %v907_v25   ;;  %1095 = vperm.xlu2 %2515, %v909_v52  }
 0x1e1   : > { %1075 = vperm.xlu0 %2516, %v905_v53  }
 0x1e2   : > { %v686_v57 = vpop.permute.xlu1 %685  ;;  %v663_v27 = vpop.permute.xlu2 %662 }
 0x1e3   : > { %v715_v59 = vmul.f32 %v686_v57, %v667_v55  ;;  %v658_v1 = vpop.permute.xlu0 %657  ;;  %v672_v30 = vsub.f32 %v2841_v0, %v663_v27  ;;  %v928_v0 = vld [vmem:[%s2932_s17 + $0x188] sm:$0xff] }
 0x1e4   : > { %v671_v29 = vsub.f32 %v2856_v6, %v658_v1  ;;  %v930_v6 = vld [vmem:[%s2932_s17 + $0x198] sm:$0xff] }
 0x1e5   : > { %v722_v60 = vpack.c.bf16 %v716_v58, %v715_v59  ;;  %v2379_v1 = vld [vmem:[%s3018_s9 + $0x18] sm:$0xff] }
 0x1e7   : > { %2167 = vmatmul.msk.bf16.gmra.mxu2 %vm325_vm0, %v722_v60  ;;  %2171 = vmatmul.msk.bf16.gmra.mxu3 %vm325_vm0, %v722_v60 }
 0x1e8   : > { %1100 = vperm.xlu1 %2514, %v910_v61   ;;  %1110 = vperm.xlu2 %2515, %v912_v62  }
 0x1e9   : > { %1090 = vperm.xlu0 %2516, %v908_v63  }
 0x1ea   : > { %v648_v4 = vpop.permute.xlu1 %647 }
 0x1eb   : > { %v669_v10 = vsub.f32 %v2847_v2, %v648_v4  ;;  %v922_v2 = vld [vmem:[%s2932_s17 + $0x158] sm:$0xff]  ;;  %s1986_s17 = scalar_lea.sflag [#allocation4], %s295_s10 }
 0x1ed   : > { %v717_v15 = vmul.f32 %v696_v12, %v669_v10  ;;  %v2391_v12 = vld [vmem:[%s3018_s9 + $0x78] sm:$0xff] }
 0x1f0   : > { %1115 = vperm.xlu1 %2514, %v913_v13   ;;  %1125 = vperm.xlu2 %2515, %v915_v19  }
 0x1f1   : > { %1105 = vperm.xlu0 %2516, %v911_v3  }
 0x1f8   : > { %1130 = vperm.xlu1 %2514, %v916_v5   ;;  %1140 = vperm.xlu2 %2515, %v918_v7  }
 0x1f9   : > { %1120 = vperm.xlu0 %2516, %v914_v9  }
 0x1fa   : > { %v701_v14 = vpop.permute.xlu1 %700 }
 0x1fb   : > { %v718_v16 = vmul.f32 %v701_v14, %v670_v11  ;;  %v2376_v11 = vld [vmem:[%s3018_s9] sm:$0xff]  ;;  %v2377_v14 = vld [vmem:[%s3018_s9 + $0x8] sm:$0xff] }
 0x1fd   : > { %v723_v17 = vpack.c.bf16 %v718_v16, %v717_v15  ;;  %v2392_v15 = vld [vmem:[%s3018_s9 + $0x80] sm:$0xff]  ;;  %v2378_v16 = vld [vmem:[%s3018_s9 + $0x10] sm:$0xff] }
 0x1ff   : > { %2168 = vmatmul.msk.bf16.gmra.mxu2 %vm325_vm0, %v723_v17  ;;  %2172 = vmatmul.msk.bf16.gmra.mxu3 %vm325_vm0, %v723_v17  ;;  %v2393_v17 = vld [vmem:[%s3018_s9 + $0x88] sm:$0xff] }
 0x200   : > { %1145 = vperm.xlu1 %2514, %v919_v18   ;;  %1155 = vperm.xlu2 %2515, %v921_v21   ;;  %v3034_v18 = vpop.permute.xlu2 %945 }
 0x201   : > { %1135 = vperm.xlu0 %2516, %v917_v22  }
 0x202   : > { %v706_v28 = vpop.permute.xlu1 %705 }
 0x203   : > { %v719_v31 = vmul.f32 %v706_v28, %v671_v29 }
 0x208   : > { %1160 = vperm.xlu1 %2514, %v922_v2   ;;  %1170 = vperm.xlu2 %2515, %v924_v23   ;;  %v3042_v22 = vpop.permute.xlu2 %960  ;;  %v2394_v2 = vld [vmem:[%s3018_s9 + $0x90] sm:$0xff] }
 0x209   : > { %1150 = vperm.xlu0 %2516, %v920_v24  }
 0x20a   : > { %v3040_v21 = vpop.permute.xlu1 %950 }
 0x20b   : > { %v711_v26 = vpop.permute.xlu0 %710 }
 0x20c   : > { %v720_v32 = vmul.f32 %v711_v26, %v672_v30  ;;  %v2380_v30 = vld [vmem:[%s3018_s9 + $0x20] sm:$0xff]  ;;  %v2395_v26 = vld [vmem:[%s3018_s9 + $0x98] sm:$0xff] }
 0x20e   : > { %v724_v33 = vpack.c.bf16 %v720_v32, %v719_v31 }
 0x210   : > { %2169 = vmatmul.msk.bf16.gmra.mxu2 %vm325_vm0, %v724_v33  ;;  %2173 = vmatmul.msk.bf16.gmra.mxu3 %vm325_vm0, %v724_v33  ;;  %v3054_v27 = vpop.permute.xlu2 %975 }
 0x211   : > { %1175 = vperm.xlu1 %2514, %v925_v34   ;;  %1185 = vperm.xlu2 %2515, %v927_v35   ;;  %v2381_v35 = vld [vmem:[%s3018_s9 + $0x28] sm:$0xff] }
 0x212   : > { %1165 = vperm.xlu0 %2516, %v923_v36   ;;  %v3050_v24 = vpop.permute.xlu1 %965  ;;  %v2396_v36 = vld [vmem:[%s3018_s9 + $0xa0] sm:$0xff] }
 0x213   : > { %v3046_v23 = vpop.permute.xlu0 %955 }
 0x218   : > { %v3062_v31 = vpop.permute.xlu2 %990 }
 0x219   : > { %1190 = vperm.xlu1 %2514, %v928_v0   ;;  %1200 = vperm.xlu2 %2515, %v930_v6  }
 0x21a   : > { %1180 = vperm.xlu0 %2516, %v926_v37   ;;  %v3058_v29 = vpop.permute.xlu1 %980 }
 0x21b   : > { %v3056_v28 = vpop.permute.xlu0 %970 }
 0x220   : > { %v3072_v34 = vpop.permute.xlu2 %1005 }
 0x221   : > { %1205 = vperm.xlu1 %2514, %v931_v38   ;;  %1215 = vperm.xlu2 %2515, %v933_v39  }
 0x222   : > { %1195 = vperm.xlu0 %2516, %v929_v40   ;;  %v3070_v33 = vpop.permute.xlu1 %995 }
 0x223   : > { %v3068_v32 = vpop.permute.xlu0 %985 }
 0x228   : > { %v3082_v37 = vpop.permute.xlu2 %1020 }
 0x229   : > { %1220 = vperm.xlu1 %2514, %v934_v42   ;;  %1230 = vperm.xlu2 %2515, %v936_v43   ;;  %v2382_v42 = vld [vmem:[%s3018_s9 + $0x30] sm:$0xff]  ;;  %v2397_v43 = vld [vmem:[%s3018_s9 + $0xa8] sm:$0xff] }
 0x22a   : > { %1210 = vperm.xlu0 %2516, %v932_v44   ;;  %v3078_v6 = vpop.permute.xlu1 %1010 }
 0x22b   : > { %v3076_v0 = vpop.permute.xlu0 %1000 }
 0x230   : > { %v3090_v40 = vpop.permute.xlu2 %1035 }
 0x231   : > { %1235 = vperm.xlu1 %2514, %v937_v41   ;;  %1245 = vperm.xlu2 %2515, %v939_v45  }
 0x232   : > { %1225 = vperm.xlu0 %2516, %v935_v46   ;;  %v3088_v39 = vpop.permute.xlu1 %1025 }
 0x233   : > { %v3086_v38 = vpop.permute.xlu0 %1015 }
 0x238   : > { %v3102_v45 = vpop.permute.xlu2 %1050 }
 0x239   : > { %1250 = vperm.xlu1 %2514, %v940_v47   ;;  %1260 = vperm.xlu2 %2515, %v942_v48   ;;  %v2383_v47 = vld [vmem:[%s3018_s9 + $0x38] sm:$0xff]  ;;  %v2398_v48 = vld [vmem:[%s3018_s9 + $0xb0] sm:$0xff] }
 0x23a   : > { %1240 = vperm.xlu0 %2516, %v938_v49   ;;  %v3100_v41 = vpop.permute.xlu1 %1040 }
 0x23b   : > { %v3096_v44 = vpop.permute.xlu0 %1030 }
 0x242   : > { %1255 = vperm.xlu0 %2516, %v941_v50   ;;  %v3108_v49 = vpop.permute.xlu1 %1055  ;;  %v3110_v50 = vpop.permute.xlu2 %1065 }
 0x243   : > { %v3104_v46 = vpop.permute.xlu0 %1045 }
 0x25a   : > { %v758_v51 = vpop.f32.mrf.mxu2  ;;  %v787_v20 = vpop.f32.mrf.mxu3 }
 0x262   : > { %v760_v25 = vpop.f32.mrf.mxu2  ;;  %v789_v52 = vpop.f32.mrf.mxu3 }
 0x263   : > { %v871_v9 = vpack.c.bf16 %v760_v25, %v758_v51  ;;  %v872_v10 = vpack.c.bf16 %v789_v52, %v787_v20  ;;  %v3116_v51 = vpop.permute.xlu0 %1060  ;;  %v3118_v20 = vpop.permute.xlu1 %1070  ;;  %v2384_v52 = vld [vmem:[%s3018_s9 + $0x40] sm:$0xff] }
 0x264   : > { %v3121_v25 = vpop.permute.xlu2 %1080 }
 0x26a   : > { %v763_v53 = vpop.f32.mrf.mxu2  ;;  %v792_v54 = vpop.f32.mrf.mxu3 }
 0x272   : > { %v765_v55 = vpop.f32.mrf.mxu2  ;;  %v794_v56 = vpop.f32.mrf.mxu3 }
 0x273   : > { %v873_v7 = vpack.c.bf16 %v765_v55, %v763_v53  ;;  %v874_v8 = vpack.c.bf16 %v794_v56, %v792_v54  ;;  %v2399_v53 = vld [vmem:[%s3018_s9 + $0xb8] sm:$0xff] }
 0x282   : > { %v768_v57 = vpop.f32.mrf.mxu2  ;;  %v797_v58 = vpop.f32.mrf.mxu3 }
 0x28a   : > { %v770_v59 = vpop.f32.mrf.mxu2  ;;  %v799_v60 = vpop.f32.mrf.mxu3 }
 0x28b   : > { %v875_v4 = vpack.c.bf16 %v770_v59, %v768_v57  ;;  %v876_v5 = vpack.c.bf16 %v799_v60, %v797_v58  ;;  %v3128_v57 = vpop.permute.xlu0 %1075  ;;  %v3136_v59 = vpop.permute.xlu1 %1085 }
 0x28c   : > { %v1096_v60 = vpop.permute.xlu2 %1095 }
 0x293   : > { %v773_v61 = vpop.f32.mrf.mxu2  ;;  %v802_v62 = vpop.f32.mrf.mxu3 }
 0x29b   : > { %v775_v63 = vpop.f32.mrf.mxu2  ;;  %v804_v13 = vpop.f32.mrf.mxu3 }
 0x29c   : > { %v877_v19 = vpack.c.bf16 %v775_v63, %v773_v61  ;;  %v878_v3 = vpack.c.bf16 %v804_v13, %v802_v62 }
 0x29e   : > { %1523 = vmatpush.bf16.msrb.mxu0 %v877_v19  ;;  %2409 = vmatpush.bf16.msrb.mxu2 %v877_v19 }
 0x29f   : > { %1692 = vmatpush.bf16.msrb.mxu1 %v878_v3  ;;  %2413 = vmatpush.bf16.msrb.mxu3 %v878_v3 }
 0x2a2   : > { %1524 = vmatpush.bf16.msrb.mxu0 %v875_v4  ;;  %2410 = vmatpush.bf16.msrb.mxu2 %v875_v4 }
 0x2a3   : > { %1693 = vmatpush.bf16.msrb.mxu1 %v876_v5  ;;  %2414 = vmatpush.bf16.msrb.mxu3 %v876_v5 }
 0x2a6   : > { %1525 = vmatpush.bf16.msrb.mxu0 %v873_v7  ;;  %2411 = vmatpush.bf16.msrb.mxu2 %v873_v7  ;;  %v3146_v7 = vpop.permute.xlu0 %1090 }
 0x2a7   : > { %1694 = vmatpush.bf16.msrb.mxu1 %v874_v8  ;;  %2415 = vmatpush.bf16.msrb.mxu3 %v874_v8  ;;  %v1101_v8 = vpop.permute.xlu1 %1100 }
 0x2aa   : > { %1526 = vmatpush.bf16.msrb.mxu0 %v871_v9  ;;  %2412 = vmatpush.bf16.msrb.mxu2 %v871_v9 }
 0x2ab   : > { %1695 = vmatpush.bf16.msrb.mxu1 %v872_v10  ;;  %2416 = vmatpush.bf16.msrb.mxu3 %v872_v10 }
 0x2ad   : > { %2302 = vmatmul.msk.bf16.vlgmr.msrb.gmra.mxu0 %vm390_vm1, %v2376_v11  ;;  %2317 = vmatmul.msk.bf16.vlgmr.msrb.gmra.mxu2 %vm390_vm1, %v2391_v12 }
 0x2ae   : > { %2334 = vmatmul.msk.bf16.vlgmr.msrb.gmra.mxu1 %vm390_vm1, %v2376_v11  ;;  %2349 = vmatmul.msk.bf16.vlgmr.msrb.gmra.mxu3 %vm390_vm1, %v2391_v12  ;;  %v2385_v12 = vld [vmem:[%s3018_s9 + $0x48] sm:$0xff] }
 0x2bd   : > { %2303 = vmatmul.msk.bf16.gmra.mxu0 %vm390_vm1, %v2377_v14  ;;  %2318 = vmatmul.msk.bf16.gmra.mxu2 %vm390_vm1, %v2392_v15 }
 0x2be   : > { %2335 = vmatmul.msk.bf16.gmra.mxu1 %vm390_vm1, %v2377_v14  ;;  %2350 = vmatmul.msk.bf16.gmra.mxu3 %vm390_vm1, %v2392_v15  ;;  %v2400_v14 = vld [vmem:[%s3018_s9 + $0xc0] sm:$0xff] }
 0x2cd   : > { %2304 = vmatmul.msk.bf16.gmra.mxu0 %vm390_vm1, %v2378_v16  ;;  %2319 = vmatmul.msk.bf16.gmra.mxu2 %vm390_vm1, %v2393_v17 }
 0x2ce   : > { %2336 = vmatmul.msk.bf16.gmra.mxu1 %vm390_vm1, %v2378_v16  ;;  %2351 = vmatmul.msk.bf16.gmra.mxu3 %vm390_vm1, %v2393_v17 }
 0x2dd   : > { %2305 = vmatmul.msk.bf16.gmra.mxu0 %vm390_vm1, %v2379_v1  ;;  %2320 = vmatmul.msk.bf16.gmra.mxu2 %vm390_vm1, %v2394_v2 }
 0x2de   : > { %2337 = vmatmul.msk.bf16.gmra.mxu1 %vm390_vm1, %v2379_v1  ;;  %2352 = vmatmul.msk.bf16.gmra.mxu3 %vm390_vm1, %v2394_v2  ;;  %v1106_v1 = vpop.permute.xlu0 %1105 }
 0x2ed   : > { %2306 = vmatmul.msk.bf16.gmra.mxu0 %vm390_vm1, %v2380_v30  ;;  %2321 = vmatmul.msk.bf16.gmra.mxu2 %vm390_vm1, %v2395_v26 }
 0x2ee   : > { %2338 = vmatmul.msk.bf16.gmra.mxu1 %vm390_vm1, %v2380_v30  ;;  %2353 = vmatmul.msk.bf16.gmra.mxu3 %vm390_vm1, %v2395_v26 }
 0x2fd   : > { %2307 = vmatmul.msk.bf16.gmra.mxu0 %vm390_vm1, %v2381_v35  ;;  %2322 = vmatmul.msk.bf16.gmra.mxu2 %vm390_vm1, %v2396_v36 }
 0x2fe   : > { %2339 = vmatmul.msk.bf16.gmra.mxu1 %vm390_vm1, %v2381_v35  ;;  %2354 = vmatmul.msk.bf16.gmra.mxu3 %vm390_vm1, %v2396_v36 }
 0x30d   : > { %2308 = vmatmul.msk.bf16.gmra.mxu0 %vm390_vm1, %v2382_v42  ;;  %2323 = vmatmul.msk.bf16.gmra.mxu2 %vm390_vm1, %v2397_v43 }
 0x30e   : > { %2340 = vmatmul.msk.bf16.gmra.mxu1 %vm390_vm1, %v2382_v42  ;;  %2355 = vmatmul.msk.bf16.gmra.mxu3 %vm390_vm1, %v2397_v43 }
 0x31d   : > { %2309 = vmatmul.msk.bf16.gmra.mxu0 %vm390_vm1, %v2383_v47  ;;  %2324 = vmatmul.msk.bf16.gmra.mxu2 %vm390_vm1, %v2398_v48 }
 0x31e   : > { %2341 = vmatmul.msk.bf16.gmra.mxu1 %vm390_vm1, %v2383_v47  ;;  %2356 = vmatmul.msk.bf16.gmra.mxu3 %vm390_vm1, %v2398_v48  ;;  %v1111_v47 = vpop.permute.xlu2 %1110 }
 0x32a   : > { %v1528_v54 = vpop.f32.mrf.mxu0 }
 0x32b   : > { %v1529_v55 = vadd.f32 %v1528_v54, %v3034_v18  ;;  %v1697_v56 = vpop.f32.mrf.mxu1  ;;  %v2386_v54 = vld [vmem:[%s3018_s9 + $0x50] sm:$0xff] }
 0x32c   : > { %v1698_v58 = vadd.f32 %v1697_v56, %v3034_v18 }
 0x32d   : > { %1857 = vst [vmem:[%s3131_s24] sm:$0xff] %v1529_v55  ;;  %2310 = vmatmul.msk.bf16.gmra.mxu0 %vm390_vm1, %v2384_v52  ;;  %2325 = vmatmul.msk.bf16.gmra.mxu2 %vm390_vm1, %v2399_v53  ;;  %v2401_v55 = vld [vmem:[%s3018_s9 + $0xc8] sm:$0xff] }
 0x32e   : > { %1858 = vst [vmem:[%s3131_s24 + $0x8] sm:$0xff] %v1698_v58  ;;  %2342 = vmatmul.msk.bf16.gmra.mxu1 %vm390_vm1, %v2384_v52  ;;  %2357 = vmatmul.msk.bf16.gmra.mxu3 %vm390_vm1, %v2399_v53 }
 0x330   : > { %v1603_v61 = vpop.f32.mrf.mxu2 }
 0x331   : > { %v1604_v62 = vadd.f32 %v1603_v61, %v1096_v60  ;;  %v1772_v63 = vpop.f32.mrf.mxu3 }
 0x332   : > { %v1773_v13 = vadd.f32 %v1772_v63, %v1096_v60  ;;  %v1530_v19 = vpop.f32.mrf.mxu0 }
 0x333   : > { %1917 = vst [vmem:[%s3131_s24 + $0x1e0] sm:$0xff] %v1604_v62  ;;  %v1531_v3 = vadd.f32 %v1530_v19, %v3040_v21  ;;  %v1699_v4 = vpop.f32.mrf.mxu1  ;;  %v1116_v62 = vpop.permute.xlu1 %1115 }
 0x334   : > { %1918 = vst [vmem:[%s3131_s24 + $0x1e8] sm:$0xff] %v1773_v13  ;;  %v1700_v5 = vadd.f32 %v1699_v4, %v3040_v21 }
 0x335   : > { %1859 = vst [vmem:[%s3131_s24 + $0x10] sm:$0xff] %v1531_v3 }
 0x336   : > { %1860 = vst [vmem:[%s3131_s24 + $0x18] sm:$0xff] %v1700_v5 }
 0x338   : > { %v1605_v9 = vpop.f32.mrf.mxu2 }
 0x339   : > { %v1606_v10 = vadd.f32 %v1605_v9, %v1101_v8  ;;  %v1774_v11 = vpop.f32.mrf.mxu3  ;;  %v1121_v9 = vpop.permute.xlu0 %1120 }
 0x33a   : > { %v1775_v15 = vadd.f32 %v1774_v11, %v1101_v8  ;;  %v1533_v16 = vpop.f32.mrf.mxu0 }
 0x33b   : > { %1919 = vst [vmem:[%s3131_s24 + $0x1f0] sm:$0xff] %v1606_v10  ;;  %v1534_v17 = vadd.f32 %v1533_v16, %v3046_v23  ;;  %v1702_v18 = vpop.f32.mrf.mxu1 }
 0x33c   : > { %1920 = vst [vmem:[%s3131_s24 + $0x1f8] sm:$0xff] %v1775_v15  ;;  %v1703_v21 = vadd.f32 %v1702_v18, %v3046_v23  ;;  %v2402_v15 = vld [vmem:[%s3018_s9 + $0xd0] sm:$0xff] }
 0x33d   : > { %1861 = vst [vmem:[%s3131_s24 + $0x20] sm:$0xff] %v1534_v17  ;;  %2311 = vmatmul.msk.bf16.gmra.mxu0 %vm390_vm1, %v2385_v12  ;;  %2326 = vmatmul.msk.bf16.gmra.mxu2 %vm390_vm1, %v2400_v14 }
 0x33e   : > { %1862 = vst [vmem:[%s3131_s24 + $0x28] sm:$0xff] %v1703_v21  ;;  %2343 = vmatmul.msk.bf16.gmra.mxu1 %vm390_vm1, %v2385_v12  ;;  %2358 = vmatmul.msk.bf16.gmra.mxu3 %vm390_vm1, %v2400_v14  ;;  %v2387_v14 = vld [vmem:[%s3018_s9 + $0x58] sm:$0xff] }
 0x340   : > { %v1608_v2 = vpop.f32.mrf.mxu2 }
 0x341   : > { %v1609_v30 = vadd.f32 %v1608_v2, %v1106_v1  ;;  %v1777_v26 = vpop.f32.mrf.mxu3 }
 0x342   : > { %v1778_v23 = vadd.f32 %v1777_v26, %v1106_v1  ;;  %v1535_v35 = vpop.f32.mrf.mxu0  ;;  %v1126_v1 = vpop.permute.xlu2 %1125 }
 0x343   : > { %1921 = vst [vmem:[%s3131_s24 + $0x200] sm:$0xff] %v1609_v30  ;;  %v1536_v36 = vadd.f32 %v1535_v35, %v3042_v22  ;;  %v1704_v42 = vpop.f32.mrf.mxu1 }
 0x344   : > { %1922 = vst [vmem:[%s3131_s24 + $0x208] sm:$0xff] %v1778_v23  ;;  %v1705_v43 = vadd.f32 %v1704_v42, %v3042_v22 }
 0x345   : > { %1863 = vst [vmem:[%s3131_s24 + $0x30] sm:$0xff] %v1536_v36 }
 0x346   : > { %1864 = vst [vmem:[%s3131_s24 + $0x38] sm:$0xff] %v1705_v43  ;;  %v1131_v43 = vpop.permute.xlu1 %1130 }
 0x348   : > { %v1610_v48 = vpop.f32.mrf.mxu2 }
 0x349   : > { %v1611_v52 = vadd.f32 %v1610_v48, %v1111_v47  ;;  %v1779_v53 = vpop.f32.mrf.mxu3 }
 0x34a   : > { %v1780_v56 = vadd.f32 %v1779_v53, %v1111_v47  ;;  %v1538_v58 = vpop.f32.mrf.mxu0  ;;  %v2388_v53 = vld [vmem:[%s3018_s9 + $0x60] sm:$0xff] }
 0x34b   : > { %1923 = vst [vmem:[%s3131_s24 + $0x210] sm:$0xff] %v1611_v52  ;;  %v1539_v60 = vadd.f32 %v1538_v58, %v3050_v24  ;;  %v1707_v61 = vpop.f32.mrf.mxu1 }
 0x34c   : > { %1924 = vst [vmem:[%s3131_s24 + $0x218] sm:$0xff] %v1780_v56  ;;  %v1708_v22 = vadd.f32 %v1707_v61, %v3050_v24  ;;  %v1136_v61 = vpop.permute.xlu0 %1135 }
 0x34d   : > { %1865 = vst [vmem:[%s3131_s24 + $0x40] sm:$0xff] %v1539_v60  ;;  %2312 = vmatmul.msk.bf16.gmra.mxu0 %vm390_vm1, %v2386_v54  ;;  %2327 = vmatmul.msk.bf16.gmra.mxu2 %vm390_vm1, %v2401_v55 }
 0x34e   : > { %1866 = vst [vmem:[%s3131_s24 + $0x48] sm:$0xff] %v1708_v22  ;;  %2344 = vmatmul.msk.bf16.gmra.mxu1 %vm390_vm1, %v2386_v54  ;;  %2359 = vmatmul.msk.bf16.gmra.mxu3 %vm390_vm1, %v2401_v55  ;;  %v2403_v54 = vld [vmem:[%s3018_s9 + $0xd8] sm:$0xff] }
 0x350   : > { %v1613_v63 = vpop.f32.mrf.mxu2 }
 0x351   : > { %v1614_v13 = vadd.f32 %v1613_v63, %v1116_v62  ;;  %v1782_v19 = vpop.f32.mrf.mxu3 }
 0x352   : > { %v1783_v24 = vadd.f32 %v1782_v19, %v1116_v62  ;;  %v1540_v3 = vpop.f32.mrf.mxu0 }
 0x353   : > { %1925 = vst [vmem:[%s3131_s24 + $0x220] sm:$0xff] %v1614_v13  ;;  %v1541_v4 = vadd.f32 %v1540_v3, %v3056_v28  ;;  %v1709_v5 = vpop.f32.mrf.mxu1 }
 0x354   : > { %1926 = vst [vmem:[%s3131_s24 + $0x228] sm:$0xff] %v1783_v24  ;;  %v1710_v8 = vadd.f32 %v1709_v5, %v3056_v28 }
 0x355   : > { %1867 = vst [vmem:[%s3131_s24 + $0x50] sm:$0xff] %v1541_v4  ;;  %v1141_v4 = vpop.permute.xlu2 %1140 }
 0x356   : > { %1868 = vst [vmem:[%s3131_s24 + $0x58] sm:$0xff] %v1710_v8 }
 0x358   : > { %v1615_v10 = vpop.f32.mrf.mxu2 }
 0x359   : > { %v1616_v11 = vadd.f32 %v1615_v10, %v1121_v9  ;;  %v1784_v12 = vpop.f32.mrf.mxu3  ;;  %v2389_v10 = vld [vmem:[%s3018_s9 + $0x68] sm:$0xff] }
 0x35a   : > { %v1785_v16 = vadd.f32 %v1784_v12, %v1121_v9  ;;  %v1543_v17 = vpop.f32.mrf.mxu0 }
 0x35b   : > { %1927 = vst [vmem:[%s3131_s24 + $0x230] sm:$0xff] %v1616_v11  ;;  %v1544_v18 = vadd.f32 %v1543_v17, %v3054_v27  ;;  %v1712_v21 = vpop.f32.mrf.mxu1  ;;  %v2404_v11 = vld [vmem:[%s3018_s9 + $0xe0] sm:$0xff]  ;;  %v1146_v17 = vpop.permute.xlu1 %1145 }
 0x35c   : > { %1928 = vst [vmem:[%s3131_s24 + $0x238] sm:$0xff] %v1785_v16  ;;  %v1713_v28 = vadd.f32 %v1712_v21, %v3054_v27 }
 0x35d   : > { %1869 = vst [vmem:[%s3131_s24 + $0x60] sm:$0xff] %v1544_v18  ;;  %2313 = vmatmul.msk.bf16.gmra.mxu0 %vm390_vm1, %v2387_v14  ;;  %2328 = vmatmul.msk.bf16.gmra.mxu2 %vm390_vm1, %v2402_v15 }
 0x35e   : > { %1870 = vst [vmem:[%s3131_s24 + $0x68] sm:$0xff] %v1713_v28  ;;  %2345 = vmatmul.msk.bf16.gmra.mxu1 %vm390_vm1, %v2387_v14  ;;  %2360 = vmatmul.msk.bf16.gmra.mxu3 %vm390_vm1, %v2402_v15 }
 0x360   : > { %v1618_v2 = vpop.f32.mrf.mxu2 }
 0x361   : > { %v1619_v30 = vadd.f32 %v1618_v2, %v1126_v1  ;;  %v1787_v26 = vpop.f32.mrf.mxu3 }
 0x362   : > { %v1788_v27 = vadd.f32 %v1787_v26, %v1126_v1  ;;  %v1545_v23 = vpop.f32.mrf.mxu0 }
 0x363   : > { %1929 = vst [vmem:[%s3131_s24 + $0x240] sm:$0xff] %v1619_v30  ;;  %v1546_v35 = vadd.f32 %v1545_v23, %v3058_v29  ;;  %v1714_v36 = vpop.f32.mrf.mxu1 }
 0x364   : > { %1930 = vst [vmem:[%s3131_s24 + $0x248] sm:$0xff] %v1788_v27  ;;  %v1715_v42 = vadd.f32 %v1714_v36, %v3058_v29  ;;  %v1151_v27 = vpop.permute.xlu0 %1150 }
 0x365   : > { %1871 = vst [vmem:[%s3131_s24 + $0x70] sm:$0xff] %v1546_v35 }
 0x366   : > { %1872 = vst [vmem:[%s3131_s24 + $0x78] sm:$0xff] %v1715_v42  ;;  %v2390_v42 = vld [vmem:[%s3018_s9 + $0x70] sm:$0xff] }
 0x368   : > { %v1620_v47 = vpop.f32.mrf.mxu2 }
 0x369   : > { %v1621_v48 = vadd.f32 %v1620_v47, %v1131_v43  ;;  %v1789_v52 = vpop.f32.mrf.mxu3 }
 0x36a   : > { %v1790_v55 = vadd.f32 %v1789_v52, %v1131_v43  ;;  %v1548_v56 = vpop.f32.mrf.mxu0  ;;  %v2405_v43 = vld [vmem:[%s3018_s9 + $0xe8] sm:$0xff] }
 0x36b   : > { %1931 = vst [vmem:[%s3131_s24 + $0x250] sm:$0xff] %v1621_v48  ;;  %v1549_v58 = vadd.f32 %v1548_v56, %v3068_v32  ;;  %v1717_v60 = vpop.f32.mrf.mxu1 }
 0x36c   : > { %1932 = vst [vmem:[%s3131_s24 + $0x258] sm:$0xff] %v1790_v55  ;;  %v1718_v29 = vadd.f32 %v1717_v60, %v3068_v32 }
 0x36d   : > { %1873 = vst [vmem:[%s3131_s24 + $0x80] sm:$0xff] %v1549_v58  ;;  %2314 = vmatmul.msk.bf16.gmra.mxu0 %vm390_vm1, %v2388_v53  ;;  %2329 = vmatmul.msk.bf16.gmra.mxu2 %vm390_vm1, %v2403_v54 }
 0x36e   : > { %1874 = vst [vmem:[%s3131_s24 + $0x88] sm:$0xff] %v1718_v29  ;;  %2346 = vmatmul.msk.bf16.gmra.mxu1 %vm390_vm1, %v2388_v53  ;;  %2361 = vmatmul.msk.bf16.gmra.mxu3 %vm390_vm1, %v2403_v54  ;;  %v1156_v54 = vpop.permute.xlu2 %1155 }
 0x370   : > { %v1623_v22 = vpop.f32.mrf.mxu2 }
 0x371   : > { %v1624_v62 = vadd.f32 %v1623_v22, %v1136_v61  ;;  %v1792_v63 = vpop.f32.mrf.mxu3 }
 0x372   : > { %v1793_v32 = vadd.f32 %v1792_v63, %v1136_v61  ;;  %v1550_v13 = vpop.f32.mrf.mxu0 }
 0x373   : > { %1933 = vst [vmem:[%s3131_s24 + $0x260] sm:$0xff] %v1624_v62  ;;  %v1551_v19 = vadd.f32 %v1550_v13, %v3062_v31  ;;  %v1719_v24 = vpop.f32.mrf.mxu1  ;;  %v1161_v62 = vpop.permute.xlu1 %1160 }
 0x374   : > { %1934 = vst [vmem:[%s3131_s24 + $0x268] sm:$0xff] %v1793_v32  ;;  %v1720_v3 = vadd.f32 %v1719_v24, %v3062_v31 }
 0x375   : > { %1875 = vst [vmem:[%s3131_s24 + $0x90] sm:$0xff] %v1551_v19  ;;  %v2406_v19 = vld [vmem:[%s3018_s9 + $0xf0] sm:$0xff] }
 0x376   : > { %1876 = vst [vmem:[%s3131_s24 + $0x98] sm:$0xff] %v1720_v3 }
 0x378   : > { %v1625_v5 = vpop.f32.mrf.mxu2 }
 0x379   : > { %v1626_v8 = vadd.f32 %v1625_v5, %v1141_v4  ;;  %v1794_v9 = vpop.f32.mrf.mxu3 }
 0x37a   : > { %v1795_v12 = vadd.f32 %v1794_v9, %v1141_v4  ;;  %v1553_v14 = vpop.f32.mrf.mxu0 }
 0x37b   : > { %1935 = vst [vmem:[%s3131_s24 + $0x270] sm:$0xff] %v1626_v8  ;;  %v1554_v15 = vadd.f32 %v1553_v14, %v3070_v33  ;;  %v1722_v16 = vpop.f32.mrf.mxu1 }
 0x37c   : > { %1936 = vst [vmem:[%s3131_s24 + $0x278] sm:$0xff] %v1795_v12  ;;  %v1723_v31 = vadd.f32 %v1722_v16, %v3070_v33 }
 0x37d   : > { %1877 = vst [vmem:[%s3131_s24 + $0xa0] sm:$0xff] %v1554_v15  ;;  %2315 = vmatmul.msk.bf16.gmra.mxu0 %vm390_vm1, %v2389_v10  ;;  %2330 = vmatmul.msk.bf16.gmra.mxu2 %vm390_vm1, %v2404_v11 }
 0x37e   : > { %1878 = vst [vmem:[%s3131_s24 + $0xa8] sm:$0xff] %v1723_v31  ;;  %2347 = vmatmul.msk.bf16.gmra.mxu1 %vm390_vm1, %v2389_v10  ;;  %2362 = vmatmul.msk.bf16.gmra.mxu3 %vm390_vm1, %v2404_v11  ;;  %v1171_v31 = vpop.permute.xlu2 %1170 }
 0x380   : > { %v1628_v18 = vpop.f32.mrf.mxu2 }
 0x381   : > { %v1629_v21 = vadd.f32 %v1628_v18, %v1146_v17  ;;  %v1797_v28 = vpop.f32.mrf.mxu3 }
 0x382   : > { %v1798_v33 = vadd.f32 %v1797_v28, %v1146_v17  ;;  %v1555_v1 = vpop.f32.mrf.mxu0  ;;  %v2407_v28 = vld [vmem:[%s3018_s9 + $0xf8] sm:$0xff] }
 0x383   : > { %1937 = vst [vmem:[%s3131_s24 + $0x280] sm:$0xff] %v1629_v21  ;;  %v1556_v2 = vadd.f32 %v1555_v1, %v3076_v0  ;;  %v1724_v30 = vpop.f32.mrf.mxu1 }
 0x384   : > { %1938 = vst [vmem:[%s3131_s24 + $0x288] sm:$0xff] %v1798_v33  ;;  %v1725_v26 = vadd.f32 %v1724_v30, %v3076_v0 }
 0x385   : > { %1879 = vst [vmem:[%s3131_s24 + $0xb0] sm:$0xff] %v1556_v2 }
 0x386   : > { %1880 = vst [vmem:[%s3131_s24 + $0xb8] sm:$0xff] %v1725_v26 }
 0x388   : > { %v1630_v23 = vpop.f32.mrf.mxu2 }
 0x389   : > { %v1631_v35 = vadd.f32 %v1630_v23, %v1151_v27  ;;  %v1799_v36 = vpop.f32.mrf.mxu3 }
 0x38a   : > { %v1800_v47 = vadd.f32 %v1799_v36, %v1151_v27  ;;  %v1558_v48 = vpop.f32.mrf.mxu0 }
 0x38b   : > { %1939 = vst [vmem:[%s3131_s24 + $0x290] sm:$0xff] %v1631_v35  ;;  %v1559_v52 = vadd.f32 %v1558_v48, %v3072_v34  ;;  %v1727_v53 = vpop.f32.mrf.mxu1 }
 0x38c   : > { %1940 = vst [vmem:[%s3131_s24 + $0x298] sm:$0xff] %v1800_v47  ;;  %v1728_v0 = vadd.f32 %v1727_v53, %v3072_v34 }
 0x38d   : > { %1881 = vst [vmem:[%s3131_s24 + $0xc0] sm:$0xff] %v1559_v52  ;;  %2316 = vmatmul.msk.bf16.gmra.mxu0 %vm390_vm1, %v2390_v42  ;;  %2331 = vmatmul.msk.bf16.gmra.mxu2 %vm390_vm1, %v2405_v43 }
 0x38e   : > { %1882 = vst [vmem:[%s3131_s24 + $0xc8] sm:$0xff] %v1728_v0  ;;  %2348 = vmatmul.msk.bf16.gmra.mxu1 %vm390_vm1, %v2390_v42  ;;  %2363 = vmatmul.msk.bf16.gmra.mxu3 %vm390_vm1, %v2405_v43 }
 0x390   : > { %v1633_v55 = vpop.f32.mrf.mxu2 }
 0x391   : > { %v1634_v56 = vadd.f32 %v1633_v55, %v1156_v54  ;;  %v1802_v58 = vpop.f32.mrf.mxu3 }
 0x392   : > { %v1803_v60 = vadd.f32 %v1802_v58, %v1156_v54  ;;  %v1560_v34 = vpop.f32.mrf.mxu0 }
 0x393   : > { %1941 = vst [vmem:[%s3131_s24 + $0x2a0] sm:$0xff] %v1634_v56  ;;  %v1561_v29 = vadd.f32 %v1560_v34, %v3078_v6  ;;  %v1729_v61 = vpop.f32.mrf.mxu1 }
 0x394   : > { %1942 = vst [vmem:[%s3131_s24 + $0x2a8] sm:$0xff] %v1803_v60  ;;  %v1730_v22 = vadd.f32 %v1729_v61, %v3078_v6  ;;  %v1166_v6 = vpop.permute.xlu0 %1165 }
 0x395   : > { %1883 = vst [vmem:[%s3131_s24 + $0xd0] sm:$0xff] %v1561_v29 }
 0x396   : > { %1884 = vst [vmem:[%s3131_s24 + $0xd8] sm:$0xff] %v1730_v22 }
 0x398   : > { %v1635_v63 = vpop.f32.mrf.mxu2 }
 0x399   : > { %v1636_v32 = vadd.f32 %v1635_v63, %v1161_v62  ;;  %v1804_v13 = vpop.f32.mrf.mxu3 }
 0x39a   : > { %v1805_v24 = vadd.f32 %v1804_v13, %v1161_v62  ;;  %v1563_v3 = vpop.f32.mrf.mxu0 }
 0x39b   : > { %1943 = vst [vmem:[%s3131_s24 + $0x2b0] sm:$0xff] %v1636_v32  ;;  %v1564_v4 = vadd.f32 %v1563_v3, %v3086_v38  ;;  %v1732_v5 = vpop.f32.mrf.mxu1 }
 0x39c   : > { %1944 = vst [vmem:[%s3131_s24 + $0x2b8] sm:$0xff] %v1805_v24  ;;  %v1733_v8 = vadd.f32 %v1732_v5, %v3086_v38  ;;  %v1181_v48 = vpop.permute.xlu0 %1180 }
 0x39d   : > { %1885 = vst [vmem:[%s3131_s24 + $0xe0] sm:$0xff] %v1564_v4  ;;  %2332 = vmatmul.msk.bf16.gmra.mxu2 %vm390_vm1, %v2406_v19 }
 0x39e   : > { %1886 = vst [vmem:[%s3131_s24 + $0xe8] sm:$0xff] %v1733_v8  ;;  %2364 = vmatmul.msk.bf16.gmra.mxu3 %vm390_vm1, %v2406_v19 }
 0x3a0   : > { %v1638_v9 = vpop.f32.mrf.mxu2 }
 0x3a1   : > { %v1639_v10 = vadd.f32 %v1638_v9, %v1166_v6  ;;  %v1807_v11 = vpop.f32.mrf.mxu3 }
 0x3a2   : > { %v1808_v12 = vadd.f32 %v1807_v11, %v1166_v6  ;;  %v1565_v14 = vpop.f32.mrf.mxu0 }
 0x3a3   : > { %1945 = vst [vmem:[%s3131_s24 + $0x2c0] sm:$0xff] %v1639_v10  ;;  %v1566_v15 = vadd.f32 %v1565_v14, %v3082_v37  ;;  %v1734_v38 = vpop.f32.mrf.mxu1 }
 0x3a4   : > { %1946 = vst [vmem:[%s3131_s24 + $0x2c8] sm:$0xff] %v1808_v12  ;;  %v1735_v16 = vadd.f32 %v1734_v38, %v3082_v37  ;;  %v1176_v37 = vpop.permute.xlu1 %1175 }
 0x3a5   : > { %1887 = vst [vmem:[%s3131_s24 + $0xf0] sm:$0xff] %v1566_v15 }
 0x3a6   : > { %1888 = vst [vmem:[%s3131_s24 + $0xf8] sm:$0xff] %v1735_v16 }
 0x3a8   : > { %v1640_v17 = vpop.f32.mrf.mxu2 }
 0x3a9   : > { %v1641_v18 = vadd.f32 %v1640_v17, %v1171_v31  ;;  %v1809_v21 = vpop.f32.mrf.mxu3 }
 0x3aa   : > { %v1810_v33 = vadd.f32 %v1809_v21, %v1171_v31  ;;  %v1568_v1 = vpop.f32.mrf.mxu0 }
 0x3ab   : > { %1947 = vst [vmem:[%s3131_s24 + $0x2d0] sm:$0xff] %v1641_v18  ;;  %v1569_v2 = vadd.f32 %v1568_v1, %v3088_v39  ;;  %v1737_v30 = vpop.f32.mrf.mxu1 }
 0x3ac   : > { %1948 = vst [vmem:[%s3131_s24 + $0x2d8] sm:$0xff] %v1810_v33  ;;  %v1738_v26 = vadd.f32 %v1737_v30, %v3088_v39 }
 0x3ad   : > { %1889 = vst [vmem:[%s3131_s24 + $0x100] sm:$0xff] %v1569_v2  ;;  %2333 = vmatmul.msk.bf16.gmra.mxu2 %vm390_vm1, %v2407_v28 }
 0x3ae   : > { %1890 = vst [vmem:[%s3131_s24 + $0x108] sm:$0xff] %v1738_v26  ;;  %2365 = vmatmul.msk.bf16.gmra.mxu3 %vm390_vm1, %v2407_v28 }
 0x3b0   : > { %v1643_v27 = vpop.f32.mrf.mxu2 }
 0x3b1   : > { %v1644_v23 = vadd.f32 %v1643_v27, %v1176_v37  ;;  %v1812_v35 = vpop.f32.mrf.mxu3 }
 0x3b2   : > { %v1813_v36 = vadd.f32 %v1812_v35, %v1176_v37  ;;  %v1570_v42 = vpop.f32.mrf.mxu0 }
 0x3b3   : > { %1949 = vst [vmem:[%s3131_s24 + $0x2e0] sm:$0xff] %v1644_v23  ;;  %v1571_v43 = vadd.f32 %v1570_v42, %v3096_v44  ;;  %v1739_v39 = vpop.f32.mrf.mxu1 }
 0x3b4   : > { %1950 = vst [vmem:[%s3131_s24 + $0x2e8] sm:$0xff] %v1813_v36  ;;  %v1740_v47 = vadd.f32 %v1739_v39, %v3096_v44  ;;  %v1186_v44 = vpop.permute.xlu2 %1185 }
 0x3b5   : > { %1891 = vst [vmem:[%s3131_s24 + $0x110] sm:$0xff] %v1571_v43 }
 0x3b6   : > { %1892 = vst [vmem:[%s3131_s24 + $0x118] sm:$0xff] %v1740_v47 }
 0x3b8   : > { %v1645_v52 = vpop.f32.mrf.mxu2 }
 0x3b9   : > { %v1646_v53 = vadd.f32 %v1645_v52, %v1181_v48  ;;  %v1814_v0 = vpop.f32.mrf.mxu3 }
 0x3ba   : > { %v1815_v54 = vadd.f32 %v1814_v0, %v1181_v48  ;;  %v1573_v55 = vpop.f32.mrf.mxu0 }
 0x3bb   : > { %1951 = vst [vmem:[%s3131_s24 + $0x2f0] sm:$0xff] %v1646_v53  ;;  %v1574_v56 = vadd.f32 %v1573_v55, %v3090_v40  ;;  %v1742_v58 = vpop.f32.mrf.mxu1 }
 0x3bc   : > { %1952 = vst [vmem:[%s3131_s24 + $0x2f8] sm:$0xff] %v1815_v54  ;;  %v1743_v60 = vadd.f32 %v1742_v58, %v3090_v40  ;;  %v1191_v40 = vpop.permute.xlu1 %1190 }
 0x3bd   : > { %1893 = vst [vmem:[%s3131_s24 + $0x120] sm:$0xff] %v1574_v56 }
 0x3be   : > { %1894 = vst [vmem:[%s3131_s24 + $0x128] sm:$0xff] %v1743_v60 }
 0x3c0   : > { %v1648_v34 = vpop.f32.mrf.mxu2 }
 0x3c1   : > { %v1649_v29 = vadd.f32 %v1648_v34, %v1186_v44  ;;  %v1817_v61 = vpop.f32.mrf.mxu3 }
 0x3c2   : > { %v1818_v22 = vadd.f32 %v1817_v61, %v1186_v44  ;;  %v1575_v62 = vpop.f32.mrf.mxu0 }
 0x3c3   : > { %1953 = vst [vmem:[%s3131_s24 + $0x300] sm:$0xff] %v1649_v29  ;;  %v1576_v63 = vadd.f32 %v1575_v62, %v3100_v41  ;;  %v1744_v32 = vpop.f32.mrf.mxu1 }
 0x3c4   : > { %1954 = vst [vmem:[%s3131_s24 + $0x308] sm:$0xff] %v1818_v22  ;;  %v1745_v13 = vadd.f32 %v1744_v32, %v3100_v41  ;;  %v1196_v41 = vpop.permute.xlu0 %1195 }
 0x3c5   : > { %1895 = vst [vmem:[%s3131_s24 + $0x130] sm:$0xff] %v1576_v63 }
 0x3c6   : > { %1896 = vst [vmem:[%s3131_s24 + $0x138] sm:$0xff] %v1745_v13 }
 0x3c8   : > { %v1650_v19 = vpop.f32.mrf.mxu2 }
 0x3c9   : > { %v1651_v24 = vadd.f32 %v1650_v19, %v1191_v40  ;;  %v1819_v3 = vpop.f32.mrf.mxu3 }
 0x3ca   : > { %v1820_v4 = vadd.f32 %v1819_v3, %v1191_v40  ;;  %v1578_v5 = vpop.f32.mrf.mxu0 }
 0x3cb   : > { %1955 = vst [vmem:[%s3131_s24 + $0x310] sm:$0xff] %v1651_v24  ;;  %v1579_v8 = vadd.f32 %v1578_v5, %v3104_v46  ;;  %v1747_v6 = vpop.f32.mrf.mxu1 }
 0x3cc   : > { %1956 = vst [vmem:[%s3131_s24 + $0x318] sm:$0xff] %v1820_v4  ;;  %v1748_v9 = vadd.f32 %v1747_v6, %v3104_v46  ;;  %v1201_v46 = vpop.permute.xlu2 %1200 }
 0x3cd   : > { %1897 = vst [vmem:[%s3131_s24 + $0x140] sm:$0xff] %v1579_v8 }
 0x3ce   : > { %1898 = vst [vmem:[%s3131_s24 + $0x148] sm:$0xff] %v1748_v9 }
 0x3d0   : > { %v1653_v10 = vpop.f32.mrf.mxu2 }
 0x3d1   : > { %v1654_v11 = vadd.f32 %v1653_v10, %v1196_v41  ;;  %v1822_v12 = vpop.f32.mrf.mxu3 }
 0x3d2   : > { %v1823_v14 = vadd.f32 %v1822_v12, %v1196_v41  ;;  %v1580_v15 = vpop.f32.mrf.mxu0 }
 0x3d3   : > { %1957 = vst [vmem:[%s3131_s24 + $0x320] sm:$0xff] %v1654_v11  ;;  %v1581_v38 = vadd.f32 %v1580_v15, %v3102_v45  ;;  %v1749_v16 = vpop.f32.mrf.mxu1 }
 0x3d4   : > { %1958 = vst [vmem:[%s3131_s24 + $0x328] sm:$0xff] %v1823_v14  ;;  %v1750_v31 = vadd.f32 %v1749_v16, %v3102_v45  ;;  %v1206_v45 = vpop.permute.xlu1 %1205 }
 0x3d5   : > { %1899 = vst [vmem:[%s3131_s24 + $0x150] sm:$0xff] %v1581_v38 }
 0x3d6   : > { %1900 = vst [vmem:[%s3131_s24 + $0x158] sm:$0xff] %v1750_v31 }
 0x3d8   : > { %v1655_v17 = vpop.f32.mrf.mxu2 }
 0x3d9   : > { %v1656_v18 = vadd.f32 %v1655_v17, %v1201_v46  ;;  %v1824_v21 = vpop.f32.mrf.mxu3 }
 0x3da   : > { %v1825_v28 = vadd.f32 %v1824_v21, %v1201_v46  ;;  %v1583_v33 = vpop.f32.mrf.mxu0 }
 0x3db   : > { %1959 = vst [vmem:[%s3131_s24 + $0x330] sm:$0xff] %v1656_v18  ;;  %v1584_v1 = vadd.f32 %v1583_v33, %v3108_v49  ;;  %v1752_v2 = vpop.f32.mrf.mxu1 }
 0x3dc   : > { %1960 = vst [vmem:[%s3131_s24 + $0x338] sm:$0xff] %v1825_v28  ;;  %v1753_v30 = vadd.f32 %v1752_v2, %v3108_v49  ;;  %v1211_v49 = vpop.permute.xlu0 %1210 }
 0x3dd   : > { %1901 = vst [vmem:[%s3131_s24 + $0x160] sm:$0xff] %v1584_v1 }
 0x3de   : > { %1902 = vst [vmem:[%s3131_s24 + $0x168] sm:$0xff] %v1753_v30 }
 0x3e0   : > { %v1658_v26 = vpop.f32.mrf.mxu2 }
 0x3e1   : > { %v1659_v37 = vadd.f32 %v1658_v26, %v1206_v45  ;;  %v1827_v27 = vpop.f32.mrf.mxu3 }
 0x3e2   : > { %v1828_v23 = vadd.f32 %v1827_v27, %v1206_v45  ;;  %v1585_v35 = vpop.f32.mrf.mxu0 }
 0x3e3   : > { %1961 = vst [vmem:[%s3131_s24 + $0x340] sm:$0xff] %v1659_v37  ;;  %v1586_v36 = vadd.f32 %v1585_v35, %v3116_v51  ;;  %v1754_v42 = vpop.f32.mrf.mxu1 }
 0x3e4   : > { %1962 = vst [vmem:[%s3131_s24 + $0x348] sm:$0xff] %v1828_v23  ;;  %v1755_v43 = vadd.f32 %v1754_v42, %v3116_v51  ;;  %v1216_v51 = vpop.permute.xlu2 %1215 }
 0x3e5   : > { %1903 = vst [vmem:[%s3131_s24 + $0x170] sm:$0xff] %v1586_v36 }
 0x3e6   : > { %1904 = vst [vmem:[%s3131_s24 + $0x178] sm:$0xff] %v1755_v43 }
 0x3e8   : > { %v1660_v39 = vpop.f32.mrf.mxu2 }
 0x3e9   : > { %v1661_v47 = vadd.f32 %v1660_v39, %v1211_v49  ;;  %v1829_v48 = vpop.f32.mrf.mxu3 }
 0x3ea   : > { %v1830_v52 = vadd.f32 %v1829_v48, %v1211_v49  ;;  %v1588_v53 = vpop.f32.mrf.mxu0 }
 0x3eb   : > { %1963 = vst [vmem:[%s3131_s24 + $0x350] sm:$0xff] %v1661_v47  ;;  %v1589_v0 = vadd.f32 %v1588_v53, %v3110_v50  ;;  %v1757_v54 = vpop.f32.mrf.mxu1 }
 0x3ec   : > { %1964 = vst [vmem:[%s3131_s24 + $0x358] sm:$0xff] %v1830_v52  ;;  %v1758_v55 = vadd.f32 %v1757_v54, %v3110_v50  ;;  %v1221_v50 = vpop.permute.xlu1 %1220 }
 0x3ed   : > { %1905 = vst [vmem:[%s3131_s24 + $0x180] sm:$0xff] %v1589_v0 }
 0x3ee   : > { %1906 = vst [vmem:[%s3131_s24 + $0x188] sm:$0xff] %v1758_v55 }
 0x3f0   : > { %v1663_v56 = vpop.f32.mrf.mxu2 }
 0x3f1   : > { %v1664_v58 = vadd.f32 %v1663_v56, %v1216_v51  ;;  %v1832_v60 = vpop.f32.mrf.mxu3 }
 0x3f2   : > { %v1833_v44 = vadd.f32 %v1832_v60, %v1216_v51  ;;  %v1590_v34 = vpop.f32.mrf.mxu0 }
 0x3f3   : > { %1965 = vst [vmem:[%s3131_s24 + $0x360] sm:$0xff] %v1664_v58  ;;  %v1591_v29 = vadd.f32 %v1590_v34, %v3118_v20  ;;  %v1759_v61 = vpop.f32.mrf.mxu1 }
 0x3f4   : > { %1966 = vst [vmem:[%s3131_s24 + $0x368] sm:$0xff] %v1833_v44  ;;  %v1760_v22 = vadd.f32 %v1759_v61, %v3118_v20  ;;  %v1226_v20 = vpop.permute.xlu0 %1225 }
 0x3f5   : > { %1907 = vst [vmem:[%s3131_s24 + $0x190] sm:$0xff] %v1591_v29 }
 0x3f6   : > { %1908 = vst [vmem:[%s3131_s24 + $0x198] sm:$0xff] %v1760_v22 }
 0x3f8   : > { %v1665_v62 = vpop.f32.mrf.mxu2 }
 0x3f9   : > { %v1666_v63 = vadd.f32 %v1665_v62, %v1221_v50  ;;  %v1834_v32 = vpop.f32.mrf.mxu3 }
 0x3fa   : > { %v1835_v13 = vadd.f32 %v1834_v32, %v1221_v50  ;;  %v1593_v40 = vpop.f32.mrf.mxu0 }
 0x3fb   : > { %1967 = vst [vmem:[%s3131_s24 + $0x370] sm:$0xff] %v1666_v63  ;;  %v1594_v19 = vadd.f32 %v1593_v40, %v3128_v57  ;;  %v1762_v24 = vpop.f32.mrf.mxu1 }
 0x3fc   : > { %1968 = vst [vmem:[%s3131_s24 + $0x378] sm:$0xff] %v1835_v13  ;;  %v1763_v3 = vadd.f32 %v1762_v24, %v3128_v57  ;;  %v1231_v57 = vpop.permute.xlu2 %1230 }
 0x3fd   : > { %1909 = vst [vmem:[%s3131_s24 + $0x1a0] sm:$0xff] %v1594_v19 }
 0x3fe   : > { %1910 = vst [vmem:[%s3131_s24 + $0x1a8] sm:$0xff] %v1763_v3 }
 0x400   : > { %v1668_v4 = vpop.f32.mrf.mxu2 }
 0x401   : > { %v1669_v5 = vadd.f32 %v1668_v4, %v1226_v20  ;;  %v1837_v8 = vpop.f32.mrf.mxu3 }
 0x402   : > { %v1838_v6 = vadd.f32 %v1837_v8, %v1226_v20  ;;  %v1595_v9 = vpop.f32.mrf.mxu0 }
 0x403   : > { %1969 = vst [vmem:[%s3131_s24 + $0x380] sm:$0xff] %v1669_v5  ;;  %v1596_v41 = vadd.f32 %v1595_v9, %v3121_v25  ;;  %v1764_v10 = vpop.f32.mrf.mxu1 }
 0x404   : > { %1970 = vst [vmem:[%s3131_s24 + $0x388] sm:$0xff] %v1838_v6  ;;  %v1765_v11 = vadd.f32 %v1764_v10, %v3121_v25  ;;  %v1236_v25 = vpop.permute.xlu1 %1235  ;;  %v1246_v35 = vpop.permute.xlu2 %1245 }
 0x405   : > { %1911 = vst [vmem:[%s3131_s24 + $0x1b0] sm:$0xff] %v1596_v41 }
 0x406   : > { %1912 = vst [vmem:[%s3131_s24 + $0x1b8] sm:$0xff] %v1765_v11 }
 0x408   : > { %v1670_v12 = vpop.f32.mrf.mxu2 }
 0x409   : > { %v1671_v14 = vadd.f32 %v1670_v12, %v1231_v57  ;;  %v1839_v15 = vpop.f32.mrf.mxu3 }
 0x40a   : > { %v1840_v38 = vadd.f32 %v1839_v15, %v1231_v57  ;;  %v1598_v16 = vpop.f32.mrf.mxu0 }
 0x40b   : > { %1971 = vst [vmem:[%s3131_s24 + $0x390] sm:$0xff] %v1671_v14  ;;  %v1599_v31 = vadd.f32 %v1598_v16, %v3136_v59  ;;  %v1767_v46 = vpop.f32.mrf.mxu1 }
 0x40c   : > { %1972 = vst [vmem:[%s3131_s24 + $0x398] sm:$0xff] %v1840_v38  ;;  %v1768_v17 = vadd.f32 %v1767_v46, %v3136_v59  ;;  %v1241_v59 = vpop.permute.xlu0 %1240  ;;  %v1261_v56 = vpop.permute.xlu2 %1260 }
 0x40d   : > { %1913 = vst [vmem:[%s3131_s24 + $0x1c0] sm:$0xff] %v1599_v31 }
 0x40e   : > { %1914 = vst [vmem:[%s3131_s24 + $0x1c8] sm:$0xff] %v1768_v17 }
 0x410   : > { %v1673_v18 = vpop.f32.mrf.mxu2 }
 0x411   : > { %v1674_v21 = vadd.f32 %v1673_v18, %v1236_v25  ;;  %v1842_v28 = vpop.f32.mrf.mxu3 }
 0x412   : > { %v1843_v33 = vadd.f32 %v1842_v28, %v1236_v25  ;;  %v1600_v1 = vpop.f32.mrf.mxu0 }
 0x413   : > { %1973 = vst [vmem:[%s3131_s24 + $0x3a0] sm:$0xff] %v1674_v21  ;;  %v1601_v2 = vadd.f32 %v1600_v1, %v3146_v7  ;;  %v1769_v30 = vpop.f32.mrf.mxu1 }
 0x414   : > { %1974 = vst [vmem:[%s3131_s24 + $0x3a8] sm:$0xff] %v1843_v33  ;;  %v1770_v45 = vadd.f32 %v1769_v30, %v3146_v7  ;;  %v1251_v7 = vpop.permute.xlu1 %1250  ;;  %v1256_v53 = vpop.permute.xlu0 %1255 }
 0x415   : > { %1915 = vst [vmem:[%s3131_s24 + $0x1d0] sm:$0xff] %v1601_v2 }
 0x416   : > { %1916 = vst [vmem:[%s3131_s24 + $0x1d8] sm:$0xff] %v1770_v45 }
 0x418   : > { %v1675_v26 = vpop.f32.mrf.mxu2 }
 0x419   : > { %v1676_v37 = vadd.f32 %v1675_v26, %v1241_v59  ;;  %v1844_v27 = vpop.f32.mrf.mxu3 }
 0x41a   : > { %v1845_v23 = vadd.f32 %v1844_v27, %v1241_v59 }
 0x41b   : > { %1975 = vst [vmem:[%s3131_s24 + $0x3b0] sm:$0xff] %v1676_v37 }
 0x41c   : > { %1976 = vst [vmem:[%s3131_s24 + $0x3b8] sm:$0xff] %v1845_v23 }
 0x420   : > { %v1678_v36 = vpop.f32.mrf.mxu2 }
 0x421   : > { %v1679_v42 = vadd.f32 %v1678_v36, %v1246_v35  ;;  %v1847_v43 = vpop.f32.mrf.mxu3 }
 0x422   : > { %v1848_v49 = vadd.f32 %v1847_v43, %v1246_v35 }
 0x423   : > { %1977 = vst [vmem:[%s3131_s24 + $0x3c0] sm:$0xff] %v1679_v42 }
 0x424   : > { %1978 = vst [vmem:[%s3131_s24 + $0x3c8] sm:$0xff] %v1848_v49 }
 0x428   : > { %v1680_v39 = vpop.f32.mrf.mxu2 }
 0x429   : > { %v1681_v47 = vadd.f32 %v1680_v39, %v1251_v7  ;;  %v1849_v48 = vpop.f32.mrf.mxu3 }
 0x42a   : > { %v1850_v52 = vadd.f32 %v1849_v48, %v1251_v7 }
 0x42b   : > { %1979 = vst [vmem:[%s3131_s24 + $0x3d0] sm:$0xff] %v1681_v47 }
 0x42c   : > { %1980 = vst [vmem:[%s3131_s24 + $0x3d8] sm:$0xff] %v1850_v52 }
 0x430   : > { %v1683_v0 = vpop.f32.mrf.mxu2 }
 0x431   : > { %v1684_v54 = vadd.f32 %v1683_v0, %v1256_v53  ;;  %v1852_v55 = vpop.f32.mrf.mxu3 }
 0x432   : > { %v1853_v51 = vadd.f32 %v1852_v55, %v1256_v53 }
 0x433   : > { %1981 = vst [vmem:[%s3131_s24 + $0x3e0] sm:$0xff] %v1684_v54 }
 0x434   : > { %1982 = vst [vmem:[%s3131_s24 + $0x3e8] sm:$0xff] %v1853_v51 }
 0x438   : > { %v1685_v58 = vpop.f32.mrf.mxu2 }
 0x439   : > { %v1686_v60 = vadd.f32 %v1685_v58, %v1261_v56  ;;  %v1854_v44 = vpop.f32.mrf.mxu3 }
 0x43a   : > { %v1855_v34 = vadd.f32 %v1854_v44, %v1261_v56 }
 0x43b   : > { %1983 = vst [vmem:[%s3131_s24 + $0x3f0] sm:$0xff] %v1686_v60 }
 0x43c   : > { %1984 = vst [vmem:[%s3131_s24 + $0x3f8] sm:$0xff] %v1855_v34 }
 0x43d   : > { %2620 = shalt.err (!%p2617_p11)
}
 0x43e   : > { %s2702_s10 = smov 256   ;;  %s2703_s24 = smov 16  }
 0x43f   : > { %2425 = dma.vmem_to_hbm [thread:$0]  (%p2786_p3), %s2002_s21, 16384, %s2004_s22, %s1986_s17, %s2702_s10, %s2702_s10, %s2703_s24  }
 0x440 PF: > { %p2442_p12 = scmp.ge.s32.totalorder %s2695_s25, 2  ;;  %s2018_s11 = sand.u32 1, %s2667_s18  }
 0x441   : > { %s2019_s12 = scalar_lea.sflag [#allocation4], %s2018_s11 }
 0x442   : > { %p2435_p13 = pnand %p2442_p12, %p2795_p8 }
 0x444   : > { %p2436_p0 = pneg %p2435_p13 }
 0x446   : > { %2662 = dma.done.wait (%p2436_p0), %s2019_s12, 16384  }
 0x447   : > { %2664 = vsyncadd (%p2436_p0), %s2019_s12, 4294950912  ;;  %s20_s25 = sadd.s32 1, %s2695_s25   ;;  %s3431_s22 = sld [smem:[#allocation11_spill]] }
 0x448   : > { %p17_p1 = scmp.ge.s32.totalorder %s20_s25, 6   ;;  %s3432_s7 = sld [smem:[#allocation12_spill]] }
 0x449   : > { %s3433_s24 = sld [smem:[#allocation13_spill]]  ;;  %s3434_s18 = smov %s2671_s19 }
 0x44a   : > { %s3435_s19 = smov %s2675_s20  ;;  %s3436_s20 = smov %s2816_s16 }
 0x44b   : > { %s3437_s21 = smov %s2687_s23  ;;  %19 = sbr.rel (!%p17_p1) target bundleno = 7 (0x7), region = 90 }
 0x44e   : > { %s3438_s23 = smov %s3432_s7 }
 0x450   :  { %2025 = vsyncpa [#allocation3], 1 }
 0x451   :  { %2027 = vsyncpa [#allocation3 + $0x1], 1 }
 0x452   :  { %2028 = vsyncpa [#allocation6], 1 }
 0x453   :  { %2029 = vsyncpa [#allocation4], 1 }
 0x454   :  { %2031 = vsyncpa [#allocation4 + $0x1], 1 }

</bundles_post_ra>
